<compile_context>
chip_gen: v7x
topology: tpu7x:2x2x1
jax: 0.10.0
libtpu: 0.0.40
codegen_flags: <defaults>
</compile_context>

<pallas_src>
import functools

import jax
import jax.numpy as jnp
from jax.experimental import pallas as pl
from jax.experimental.pallas import tpu as pltpu


def _round_up(x, m):
    return ((x + m - 1) // m) * m


def _tpu_generation():
    """Best-effort TPU generation (5/6/7); unknown -> 7 (most conservative VMEM)."""
    try:
        kind = jax.devices()[0].device_kind.lower()
    except Exception:
        return 7
    if "v7" in kind or "7x" in kind:
        return 7
    if "v6" in kind:
        return 6
    if "v5" in kind:
        return 5
    return 7


def _choose_h_tile(hout, wp_r, *, target_rows, min_tiles):
    """Largest divisor th of Hout with th*Wp_r <= target_rows, giving >= min_tiles tiles.

    Wp_r is a multiple of 8, so ANY th keeps the output block's second-minor dim a
    multiple of 8 -- there is no fallback to a single giant tile anymore.
    """
    divs = [t for t in range(1, hout + 1) if hout % t == 0]
    ok = [t for t in divs if hout // t >= min_tiles] or divs
    fitting = [t for t in ok if t * wp_r <= target_rows]
    return max(fitting) if fitting else min(ok)


def _conv_bn_relu_kernel(x_ref, w_ref, scale_ref, shift_ref, o_ref, *,
                         th, wp_r, kh_sz, n_h_tiles):
    """Fused stride-1 conv + BN affine + ReLU on one (th H-rows x Wp_r cols) tile.

    x_ref:     (1, Hp*Wp_r, KW*Cin)  bf16 padded NHWC image, KW taps folded into lanes
    w_ref:     (KH, KW*Cin, Cout_p)  bf16 conv weights (BN scale NOT folded in)
    scale_ref: (1, Cout_p)           f32  gamma / sqrt(var + eps)
    shift_ref: (1, Cout_p)           f32  beta - mean * scale
    o_ref:     (1, th*Wp_r, Cout_p)  bf16 output tile; rows are (h, w_padded) flattened
    """
    m = th * wp_r
    if n_h_tiles == 1:
        row0 = 0                                         # fully static slicing
    else:
        row0 = pl.multiple_of(pl.program_id(1) * m, 8)   # m % 8 == 0 by construction

    # Value accumulation over the KH taps: one K = KW*Cin matmul per tap, accumulated in
    # the MXU result path / registers and stored once.  No VMEM accumulator RMW traffic.
    # Flat-window invariant: the (kh) tap of output flat row r is input flat row
    # r + kh*Wp_r (the KW shift already lives in the lane dimension), and the last tile's
    # deepest read is exactly row Hp*Wp_r - 1, so no tail padding / wrap-around is needed.
    acc = jnp.dot(x_ref[0, pl.ds(row0, m), :], w_ref[0],
                  preferred_element_type=jnp.float32)
    for kh in range(1, kh_sz):
        acc = acc + jnp.dot(x_ref[0, pl.ds(row0 + kh * wp_r, m), :], w_ref[kh],
                            preferred_element_type=jnp.float32)

    y = jnp.maximum(acc * scale_ref[...] + shift_ref[...], 0.0)
    o_ref[0, :, :] = y.astype(o_ref.dtype)


def _conv_bn_relu_call(x3, w_k, scale_p, shift_p, *, hout, wp_r, kh_sz, cout_p,
                       th, n_h_tiles, vmem_limit, const_pipeline_mode):
    n, lp, kc = x3.shape
    m = th * wp_r
    kernel = functools.partial(_conv_bn_relu_kernel, th=th, wp_r=wp_r,
                               kh_sz=kh_sz, n_h_tiles=n_h_tiles)
    const_kw = {} if const_pipeline_mode is None else {"pipeline_mode": const_pipeline_mode}
    return pl.pallas_call(
        kernel,
        out_shape=jax.ShapeDtypeStruct((n, hout * wp_r, cout_p), jnp.bfloat16),
        grid_spec=pltpu.PrefetchScalarGridSpec(
            num_scalar_prefetch=0,
            grid=(n, n_h_tiles),
            in_specs=[
                # Whole flattened padded image per batch element; re-DMA'd only when the
                # batch index changes (j is the inner grid axis).
                # TODO(synk): for very large early-layer activations, switch to a halo-tiled
                # input block per j instead of holding the whole image in VMEM.
                pl.BlockSpec((1, lp, kc), lambda i, j: (i, 0, 0)),
                # Constant-index blocks: DMA'd once for the whole grid; single-buffered
                # when the Pallas version supports it (saves VMEM headroom on v7x).
                pl.BlockSpec((kh_sz, kc, cout_p), lambda i, j: (0, 0, 0), **const_kw),
                pl.BlockSpec((1, cout_p), lambda i, j: (0, 0), **const_kw),
                pl.BlockSpec((1, cout_p), lambda i, j: (0, 0), **const_kw),
            ],
            out_specs=pl.BlockSpec((1, m, cout_p), lambda i, j: (i, j, 0)),
        ),
        compiler_params=pltpu.CompilerParams(
            dimension_semantics=("parallel", "parallel"),
            vmem_limit_bytes=vmem_limit,
        ),
    )(x3, w_k, scale_p, shift_p)


def basic_conv2d_forward_nhwc(x_nhwc, weight, gamma, beta, running_mean, running_var,
                              *, padding=1, eps=1e-3):
    """BasicConv2d forward (eval-mode BN) on NHWC activations; returns NHWC bf16.

    Keeping activations NHWC/bf16 end-to-end avoids the NCHW<->NHWC transpose HBM passes.
    """
    # TODO(synk): only stride=1, dilation=1, groups=1 convolutions are supported.
    n, h, w, cin = x_nhwc.shape
    cout, cin_w, kh_sz, kw_sz = weight.shape
    assert cin == cin_w
    hp, wp = h + 2 * padding, w + 2 * padding
    hout, wout = hp - kh_sz + 1, wp - kw_sz + 1
    wp_r = _round_up(wp, 8)            # padded flat row stride (kills the odd-Wp tile cliff)
    cout_p = _round_up(cout, 128)      # lane-dense output channels

    # Spatial pad (+ W rounding pad) and KW lane-fold:
    #   x3[n, h, w, kw*Cin + c] = x_pad[n, h, w + kw, c]   (0 past the row end).
    # After flattening (H, W) the kh tap of the conv for output flat row r = h*Wp_r + w is
    # simply flat row r + kh*Wp_r, with the whole KW*Cin contraction already in the lanes.
    xp = jnp.pad(x_nhwc, ((0, 0), (padding, padding),
                          (padding, padding + (wp_r - wp)), (0, 0)))
    x3 = jnp.concatenate(
        [jnp.pad(xp[:, :, kw:, :], ((0, 0), (0, 0), (0, kw), (0, 0)))
         for kw in range(kw_sz)], axis=-1)
    x3 = x3.reshape(n, hp * wp_r, kw_sz * cin).astype(jnp.bfloat16)

    # Weights: (Cout, Cin, KH, KW) -> (KH, KW*Cin, Cout_p), bf16, UNscaled.  The BN scale
    # is applied to the f32 accumulator in-kernel (avoids bf16-quantizing scale*W).
    w_k = jnp.transpose(weight, (2, 3, 1, 0))
    w_k = jnp.pad(w_k, ((0, 0), (0, 0), (0, 0), (0, cout_p - cout)))
    w_k = w_k.reshape(kh_sz, kw_sz * cin, cout_p).astype(jnp.bfloat16)

    scale = (gamma / jnp.sqrt(running_var + eps)).astype(jnp.float32)   # (Cout,)
    shift = (beta - running_mean * scale).astype(jnp.float32)           # (Cout,)
    scale_p = jnp.pad(scale, (0, cout_p - cout)).reshape(1, cout_p)
    shift_p = jnp.pad(shift, (0, cout_p - cout)).reshape(1, cout_p)

    # Per-generation tile size / VMEM budget.
    gen = _tpu_generation()
    target_rows = 2048 if gen in (5, 6) else 1024
    if cout_p >= 384:
        target_rows = max(256, target_rows // 2)
    min_tiles = 2 if (gen == 7 and n < 2) else 1    # keep both v7x TensorCores busy
    th = _choose_h_tile(hout, wp_r, target_rows=target_rows, min_tiles=min_tiles)
    n_h_tiles = hout // th
    m = th * wp_r

    kc = kw_sz * cin
    need = (2 * hp * wp_r * kc * 2          # double-buffered bf16 image block
            + kh_sz * kc * cout_p * 2       # weights (constant index)
            + 2 * cout_p * 4                # scale + shift
            + 2 * m * cout_p * 2)           # double-buffered bf16 output block
    ceiling = (100 << 20) if gen in (5, 6) else (44 << 20)   # headroom under 128 / 64 MiB
    vmem_limit = int(min(ceiling, max(32 << 20, 2 * need + (4 << 20))))

    call = functools.partial(
        _conv_bn_relu_call, x3, w_k, scale_p, shift_p,
        hout=hout, wp_r=wp_r, kh_sz=kh_sz, cout_p=cout_p,
        th=th, n_h_tiles=n_h_tiles, vmem_limit=vmem_limit)
    try:
        y2 = call(const_pipeline_mode=pl.Buffered(1))
        jax.block_until_ready(y2)    # surface any lowering/runtime issue here
    except Exception:                # pragma: no cover - Pallas without single-buffer support
        y2 = call(const_pipeline_mode=None)

    # (N, Hout*Wp_r, Cout_p) -> (N, Hout, Wout, Cout) NHWC bf16.
    return y2.reshape(n, hout, wp_r, cout_p)[:, :, :wout, :cout]


def basic_conv2d_forward(x_nchw, weight, gamma, beta, running_mean, running_var,
                         *, padding=1, eps=1e-3):
    """Drop-in NCHW wrapper around the NHWC fast path (PyTorch layout compatibility).

    In a full network, chain basic_conv2d_forward_nhwc directly so the NCHW<->NHWC
    transpose passes (extra HBM traffic) disappear entirely.
    """
    x_nhwc = jnp.transpose(x_nchw, (0, 2, 3, 1))
    y = basic_conv2d_forward_nhwc(x_nhwc, weight, gamma, beta, running_mean,
                                  running_var, padding=padding, eps=eps)
    return jnp.transpose(y, (0, 3, 1, 2))


if __name__ == "__main__":
    # Module hyperparameters (the **kwargs of nn.Conv2d): kernel_size=3, padding=1.
    N, Cin, H, W = 2, 4, 16, 16
    Cout, KH, KW = 8, 3, 3
    eps = 1e-3

    key = jax.random.PRNGKey(0)
    kx, kwkey = jax.random.split(key)
    x = jax.random.normal(kx, (N, Cin, H, W), dtype=jnp.float32)

    fan_in = Cin * KH * KW
    weight = jax.random.normal(kwkey, (Cout, Cin, KH, KW), dtype=jnp.float32) * (1.0 / fan_in) ** 0.5
    gamma = jnp.ones((Cout,), jnp.float32)          # bn.weight default
    beta = jnp.zeros((Cout,), jnp.float32)          # bn.bias default
    running_mean = jnp.zeros((Cout,), jnp.float32)  # bn.running_mean default
    running_var = jnp.ones((Cout,), jnp.float32)    # bn.running_var default
    # TODO(synk): training-mode BatchNorm (batch statistics) is not implemented; eval-mode
    # running-stats BN is applied as a per-channel f32 affine on the conv accumulator.

    out = basic_conv2d_forward(x, weight, gamma, beta, running_mean, running_var,
                               padding=1, eps=eps)
    out = jax.block_until_ready(out)
    assert out.shape == (N, Cout, H, W)
    assert bool(jnp.all(out >= 0.0))  # ReLU sanity

    # Reference check (f32 conv + BN + ReLU); bf16 matmul operands/output => loose tolerance.
    ref = jax.lax.conv_general_dilated(
        x, weight, window_strides=(1, 1), padding=((1, 1), (1, 1)),
        dimension_numbers=("NCHW", "OIHW", "NCHW"))
    scale = gamma / jnp.sqrt(running_var + eps)
    ref = jnp.maximum(ref * scale[None, :, None, None]
                      + (beta - running_mean * scale)[None, :, None, None], 0.0)
    max_err = float(jnp.max(jnp.abs(out.astype(jnp.float32) - ref)))
    assert max_err < 5e-2, f"max abs error {max_err}"
    print("KERNEL_OK")
</pallas_src>

<mosaic_0001>
module attributes {stable_mosaic.version = 11 : i64} {
  func.func @_conv_bn_relu_kernel(%arg0: i32, %arg1: i32, %arg2: memref<1x432x12xbf16, #tpu.memory_space<vmem>>, %arg3: memref<3x12x128xbf16, #tpu.memory_space<vmem>>, %arg4: memref<1x128xf32, #tpu.memory_space<vmem>>, %arg5: memref<1x128xf32, #tpu.memory_space<vmem>>, %arg6: memref<1x384x128xbf16, #tpu.memory_space<vmem>>) attributes {dimension_semantics = [#tpu.dimension_semantics<parallel>, #tpu.dimension_semantics<parallel>], iteration_bounds = array<i64: 2, 1>, scalar_prefetch = 0 : i64, scratch_operands = 0 : i64, tpu.core_type = #tpu.core_type<tc>, window_params = [{transform_indices = @transform_0, window_bounds = array<i64: 1, 432, 12>}, {pipeline_mode = #tpu.pipeline_mode<synchronous>, transform_indices = @transform_1, window_bounds = array<i64: 3, 12, 128>}, {pipeline_mode = #tpu.pipeline_mode<synchronous>, transform_indices = @transform_2, window_bounds = array<i64: 1, 128>}, {pipeline_mode = #tpu.pipeline_mode<synchronous>, transform_indices = @transform_3, window_bounds = array<i64: 1, 128>}, {transform_indices = @transform_4, window_bounds = array<i64: 1, 384, 128>}]} {
    %c0 = arith.constant 0 : index
    %c0_0 = arith.constant 0 : index
    %c0_1 = arith.constant 0 : index
    %0 = vector.load %arg2[%c0, %c0_0, %c0_1] : memref<1x432x12xbf16, #tpu.memory_space<vmem>>, vector<1x384x12xbf16>
    %1 = vector.shape_cast %0 : vector<1x384x12xbf16> to vector<384x12xbf16>
    %c0_2 = arith.constant 0 : index
    %c0_3 = arith.constant 0 : index
    %c0_4 = arith.constant 0 : index
    %2 = vector.load %arg3[%c0_2, %c0_3, %c0_4] : memref<3x12x128xbf16, #tpu.memory_space<vmem>>, vector<1x12x128xbf16>
    %3 = vector.shape_cast %2 : vector<1x12x128xbf16> to vector<12x128xbf16>
    %cst = arith.constant dense<0.000000e+00> : vector<384x128xf32>
    %4 = tpu.matmul %1, %3, %cst {dimension_numbers = #tpu.dot_dimension_numbers<[1], [0], [0], [1], [0, 0, 1, 1], [], []>} : vector<384x12xbf16>, vector<12x128xbf16>, vector<384x128xf32> -> vector<384x128xf32>
    %c0_5 = arith.constant 0 : index
    %c24 = arith.constant 24 : index
    %c0_6 = arith.constant 0 : index
    %5 = vector.load %arg2[%c0_5, %c24, %c0_6] : memref<1x432x12xbf16, #tpu.memory_space<vmem>>, vector<1x384x12xbf16>
    %6 = vector.shape_cast %5 : vector<1x384x12xbf16> to vector<384x12xbf16>
    %c1 = arith.constant 1 : index
    %c0_7 = arith.constant 0 : index
    %c0_8 = arith.constant 0 : index
    %7 = vector.load %arg3[%c1, %c0_7, %c0_8] : memref<3x12x128xbf16, #tpu.memory_space<vmem>>, vector<1x12x128xbf16>
    %8 = vector.shape_cast %7 : vector<1x12x128xbf16> to vector<12x128xbf16>
    %cst_9 = arith.constant dense<0.000000e+00> : vector<384x128xf32>
    %9 = tpu.matmul %6, %8, %cst_9 {dimension_numbers = #tpu.dot_dimension_numbers<[1], [0], [0], [1], [0, 0, 1, 1], [], []>} : vector<384x12xbf16>, vector<12x128xbf16>, vector<384x128xf32> -> vector<384x128xf32>
    %10 = arith.addf %4, %9 : vector<384x128xf32>
    %c0_10 = arith.constant 0 : index
    %c48 = arith.constant 48 : index
    %c0_11 = arith.constant 0 : index
    %11 = vector.load %arg2[%c0_10, %c48, %c0_11] : memref<1x432x12xbf16, #tpu.memory_space<vmem>>, vector<1x384x12xbf16>
    %12 = vector.shape_cast %11 : vector<1x384x12xbf16> to vector<384x12xbf16>
    %c2 = arith.constant 2 : index
    %c0_12 = arith.constant 0 : index
    %c0_13 = arith.constant 0 : index
    %13 = vector.load %arg3[%c2, %c0_12, %c0_13] : memref<3x12x128xbf16, #tpu.memory_space<vmem>>, vector<1x12x128xbf16>
    %14 = vector.shape_cast %13 : vector<1x12x128xbf16> to vector<12x128xbf16>
    %cst_14 = arith.constant dense<0.000000e+00> : vector<384x128xf32>
    %15 = tpu.matmul %12, %14, %cst_14 {dimension_numbers = #tpu.dot_dimension_numbers<[1], [0], [0], [1], [0, 0, 1, 1], [], []>} : vector<384x12xbf16>, vector<12x128xbf16>, vector<384x128xf32> -> vector<384x128xf32>
    %16 = arith.addf %10, %15 : vector<384x128xf32>
    %c0_15 = arith.constant 0 : index
    %c0_16 = arith.constant 0 : index
    %17 = vector.load %arg4[%c0_15, %c0_16] : memref<1x128xf32, #tpu.memory_space<vmem>>, vector<1x128xf32>
    %18 = vector.broadcast %17 : vector<1x128xf32> to vector<384x128xf32>
    %19 = arith.mulf %16, %18 : vector<384x128xf32>
    %c0_17 = arith.constant 0 : index
    %c0_18 = arith.constant 0 : index
    %20 = vector.load %arg5[%c0_17, %c0_18] : memref<1x128xf32, #tpu.memory_space<vmem>>, vector<1x128xf32>
    %21 = vector.broadcast %20 : vector<1x128xf32> to vector<384x128xf32>
    %22 = arith.addf %19, %21 : vector<384x128xf32>
    %cst_19 = arith.constant 0.000000e+00 : f32
    %23 = vector.broadcast %cst_19 : f32 to vector<384x128xf32>
    %24 = arith.maximumf %22, %23 : vector<384x128xf32>
    %25 = arith.truncf %24 : vector<384x128xf32> to vector<384x128xbf16>
    %c0_20 = arith.constant 0 : index
    %c0_21 = arith.constant 0 : index
    %c0_22 = arith.constant 0 : index
    %26 = vector.load %arg6[%c0_20, %c0_21, %c0_22] : memref<1x384x128xbf16, #tpu.memory_space<vmem>>, vector<1x384x128xbf16>
    %27 = vector.shape_cast %26 : vector<1x384x128xbf16> to vector<384x128xbf16>
    %28 = vector.shape_cast %25 : vector<384x128xbf16> to vector<1x384x128xbf16>
    tpu.vector_store %arg6[%c0_20, %c0_21, %c0_22], %28 {strides = array<i32>} : memref<1x384x128xbf16, #tpu.memory_space<vmem>>, vector<1x384x128xbf16>,
    return
  }
  func.func @transform_0(%arg0: i32, %arg1: i32) -> (i32, i32, i32) {
    %c0_i32 = arith.constant 0 : i32
    %c0_i32_0 = arith.constant 0 : i32
    %c0_i32_1 = arith.constant 0 : i32
    return %arg0, %c0_i32, %c0_i32_0 : i32, i32, i32
  }
  func.func @transform_1(%arg0: i32, %arg1: i32) -> (i32, i32, i32) {
    %c0_i32 = arith.constant 0 : i32
    %c0_i32_0 = arith.constant 0 : i32
    %c0_i32_1 = arith.constant 0 : i32
    %c0_i32_2 = arith.constant 0 : i32
    return %c0_i32, %c0_i32_0, %c0_i32_1 : i32, i32, i32
  }
  func.func @transform_2(%arg0: i32, %arg1: i32) -> (i32, i32) {
    %c0_i32 = arith.constant 0 : i32
    %c0_i32_0 = arith.constant 0 : i32
    %c0_i32_1 = arith.constant 0 : i32
    return %c0_i32, %c0_i32_0 : i32, i32
  }
  func.func @transform_3(%arg0: i32, %arg1: i32) -> (i32, i32) {
    %c0_i32 = arith.constant 0 : i32
    %c0_i32_0 = arith.constant 0 : i32
    %c0_i32_1 = arith.constant 0 : i32
    return %c0_i32, %c0_i32_0 : i32, i32
  }
  func.func @transform_4(%arg0: i32, %arg1: i32) -> (i32, i32, i32) {
    %c0_i32 = arith.constant 0 : i32
    %c0_i32_0 = arith.constant 0 : i32
    return %arg0, %arg1, %c0_i32 : i32, i32, i32
  }
}

module attributes {stable_mosaic.version = 11 : i64} {
  func.func @_conv_bn_relu_kernel(%arg0: i32, %arg1: i32, %arg2: memref<1x432x12xbf16, #tpu.memory_space<vmem>>, %arg3: memref<3x12x128xbf16, #tpu.memory_space<vmem>>, %arg4: memref<1x128xf32, #tpu.memory_space<vmem>>, %arg5: memref<1x128xf32, #tpu.memory_space<vmem>>, %arg6: memref<1x384x128xbf16, #tpu.memory_space<vmem>>) attributes {dimension_semantics = [#tpu.dimension_semantics<parallel>, #tpu.dimension_semantics<parallel>], iteration_bounds = array<i64: 2, 1>, scalar_prefetch = 0 : i64, scratch_operands = 0 : i64, tpu.core_type = #tpu.core_type<tc>, window_params = [{transform_indices = @transform_0, window_bounds = array<i64: 1, 432, 12>}, {pipeline_mode = #tpu.pipeline_mode<synchronous>, transform_indices = @transform_1, window_bounds = array<i64: 3, 12, 128>}, {pipeline_mode = #tpu.pipeline_mode<synchronous>, transform_indices = @transform_2, window_bounds = array<i64: 1, 128>}, {pipeline_mode = #tpu.pipeline_mode<synchronous>, transform_indices = @transform_3, window_bounds = array<i64: 1, 128>}, {transform_indices = @transform_4, window_bounds = array<i64: 1, 384, 128>}]} {
    %c0 = arith.constant 0 : index
    %c0_0 = arith.constant 0 : index
    %c0_1 = arith.constant 0 : index
    %0 = vector.load %arg2[%c0, %c0_0, %c0_1] : memref<1x432x12xbf16, #tpu.memory_space<vmem>>, vector<1x384x12xbf16>
    %1 = vector.shape_cast %0 : vector<1x384x12xbf16> to vector<384x12xbf16>
    %c0_2 = arith.constant 0 : index
    %c0_3 = arith.constant 0 : index
    %c0_4 = arith.constant 0 : index
    %2 = vector.load %arg3[%c0_2, %c0_3, %c0_4] : memref<3x12x128xbf16, #tpu.memory_space<vmem>>, vector<1x12x128xbf16>
    %3 = vector.shape_cast %2 : vector<1x12x128xbf16> to vector<12x128xbf16>
    %cst = arith.constant dense<0.000000e+00> : vector<384x128xf32>
    %4 = tpu.matmul %1, %3, %cst {dimension_numbers = #tpu.dot_dimension_numbers<[1], [0], [0], [1], [0, 0, 1, 1], [], []>} : vector<384x12xbf16>, vector<12x128xbf16>, vector<384x128xf32> -> vector<384x128xf32>
    %c0_5 = arith.constant 0 : index
    %c24 = arith.constant 24 : index
    %c0_6 = arith.constant 0 : index
    %5 = vector.load %arg2[%c0_5, %c24, %c0_6] : memref<1x432x12xbf16, #tpu.memory_space<vmem>>, vector<1x384x12xbf16>
    %6 = vector.shape_cast %5 : vector<1x384x12xbf16> to vector<384x12xbf16>
    %c1 = arith.constant 1 : index
    %c0_7 = arith.constant 0 : index
    %c0_8 = arith.constant 0 : index
    %7 = vector.load %arg3[%c1, %c0_7, %c0_8] : memref<3x12x128xbf16, #tpu.memory_space<vmem>>, vector<1x12x128xbf16>
    %8 = vector.shape_cast %7 : vector<1x12x128xbf16> to vector<12x128xbf16>
    %cst_9 = arith.constant dense<0.000000e+00> : vector<384x128xf32>
    %9 = tpu.matmul %6, %8, %cst_9 {dimension_numbers = #tpu.dot_dimension_numbers<[1], [0], [0], [1], [0, 0, 1, 1], [], []>} : vector<384x12xbf16>, vector<12x128xbf16>, vector<384x128xf32> -> vector<384x128xf32>
    %10 = arith.addf %4, %9 : vector<384x128xf32>
    %c0_10 = arith.constant 0 : index
    %c48 = arith.constant 48 : index
    %c0_11 = arith.constant 0 : index
    %11 = vector.load %arg2[%c0_10, %c48, %c0_11] : memref<1x432x12xbf16, #tpu.memory_space<vmem>>, vector<1x384x12xbf16>
    %12 = vector.shape_cast %11 : vector<1x384x12xbf16> to vector<384x12xbf16>
    %c2 = arith.constant 2 : index
    %c0_12 = arith.constant 0 : index
    %c0_13 = arith.constant 0 : index
    %13 = vector.load %arg3[%c2, %c0_12, %c0_13] : memref<3x12x128xbf16, #tpu.memory_space<vmem>>, vector<1x12x128xbf16>
    %14 = vector.shape_cast %13 : vector<1x12x128xbf16> to vector<12x128xbf16>
    %cst_14 = arith.constant dense<0.000000e+00> : vector<384x128xf32>
    %15 = tpu.matmul %12, %14, %cst_14 {dimension_numbers = #tpu.dot_dimension_numbers<[1], [0], [0], [1], [0, 0, 1, 1], [], []>} : vector<384x12xbf16>, vector<12x128xbf16>, vector<384x128xf32> -> vector<384x128xf32>
    %16 = arith.addf %10, %15 : vector<384x128xf32>
    %c0_15 = arith.constant 0 : index
    %c0_16 = arith.constant 0 : index
    %17 = vector.load %arg4[%c0_15, %c0_16] : memref<1x128xf32, #tpu.memory_space<vmem>>, vector<1x128xf32>
    %18 = vector.broadcast %17 : vector<1x128xf32> to vector<384x128xf32>
    %19 = arith.mulf %16, %18 : vector<384x128xf32>
    %c0_17 = arith.constant 0 : index
    %c0_18 = arith.constant 0 : index
    %20 = vector.load %arg5[%c0_17, %c0_18] : memref<1x128xf32, #tpu.memory_space<vmem>>, vector<1x128xf32>
    %21 = vector.broadcast %20 : vector<1x128xf32> to vector<384x128xf32>
    %22 = arith.addf %19, %21 : vector<384x128xf32>
    %cst_19 = arith.constant 0.000000e+00 : f32
    %23 = vector.broadcast %cst_19 : f32 to vector<384x128xf32>
    %24 = arith.maximumf %22, %23 : vector<384x128xf32>
    %25 = arith.truncf %24 : vector<384x128xf32> to vector<384x128xbf16>
    %c0_20 = arith.constant 0 : index
    %c0_21 = arith.constant 0 : index
    %c0_22 = arith.constant 0 : index
    %26 = vector.load %arg6[%c0_20, %c0_21, %c0_22] : memref<1x384x128xbf16, #tpu.memory_space<vmem>>, vector<1x384x128xbf16>
    %27 = vector.shape_cast %26 : vector<1x384x128xbf16> to vector<384x128xbf16>
    %28 = vector.shape_cast %25 : vector<384x128xbf16> to vector<1x384x128xbf16>
    tpu.vector_store %arg6[%c0_20, %c0_21, %c0_22], %28 {strides = array<i32>} : memref<1x384x128xbf16, #tpu.memory_space<vmem>>, vector<1x384x128xbf16>,
    return
  }
  func.func @transform_0(%arg0: i32, %arg1: i32) -> (i32, i32, i32) {
    %c0_i32 = arith.constant 0 : i32
    %c0_i32_0 = arith.constant 0 : i32
    %c0_i32_1 = arith.constant 0 : i32
    return %arg0, %c0_i32, %c0_i32_0 : i32, i32, i32
  }
  func.func @transform_1(%arg0: i32, %arg1: i32) -> (i32, i32, i32) {
    %c0_i32 = arith.constant 0 : i32
    %c0_i32_0 = arith.constant 0 : i32
    %c0_i32_1 = arith.constant 0 : i32
    %c0_i32_2 = arith.constant 0 : i32
    return %c0_i32, %c0_i32_0, %c0_i32_1 : i32, i32, i32
  }
  func.func @transform_2(%arg0: i32, %arg1: i32) -> (i32, i32) {
    %c0_i32 = arith.constant 0 : i32
    %c0_i32_0 = arith.constant 0 : i32
    %c0_i32_1 = arith.constant 0 : i32
    return %c0_i32, %c0_i32_0 : i32, i32
  }
  func.func @transform_3(%arg0: i32, %arg1: i32) -> (i32, i32) {
    %c0_i32 = arith.constant 0 : i32
    %c0_i32_0 = arith.constant 0 : i32
    %c0_i32_1 = arith.constant 0 : i32
    return %c0_i32, %c0_i32_0 : i32, i32
  }
  func.func @transform_4(%arg0: i32, %arg1: i32) -> (i32, i32, i32) {
    %c0_i32 = arith.constant 0 : i32
    %c0_i32_0 = arith.constant 0 : i32
    return %arg0, %arg1, %c0_i32 : i32, i32, i32
  }
}

</mosaic_0001>

<bundles_post_ra>
// kernel: tpu_custom_call.1
= control target key start
LH: loop header
LB: loop body
LE: loop exit
PB: predicated region body
PF: predicated region fallthrough
CT: control target
= control target key end

     0   :  { %9 = vsyncpa [#allocation3], 0  ;;  %s3563_s0 = inlined_call_operand.vmem [shape: bf16[2,432,12], index: 0, kind: input, shape index: {}]   ;;  %s3564_s1 = inlined_call_operand.vmem [shape: bf16[3,12,128], index: 1, kind: input, shape index: {}]   ;;  %s3565_s2 = inlined_call_operand.vmem [shape: f32[1,128], index: 2, kind: input, shape index: {}]   ;;  %s3566_s3 = inlined_call_operand.vmem [shape: f32[1,128], index: 3, kind: input, shape index: {}]   ;;  %s3567_s4 = inlined_call_operand.hbm [shape: bf16[2,384,128], index: 4, kind: output, shape index: {}]  }
   0x1   :  { %11 = vsyncpa [#allocation3 + $0x1], 0  ;;  %s3012_s15 = smov 0   ;;  %s3014_s16 = smov 0  }
   0x2   :  { %s3016_s17 = smov 0   ;;  %s3018_s18 = smov 0  }
   0x3   :  { %s3020_s19 = smov 0   ;;  %s3022_s20 = smov 0  }
   0x4 LB: > { %s2041_s21 = sadd.s32 4294967295, %s2982_s20   ;;  %s2042_s22 = sadd.s32 4294967294, %s2982_s20   ;;  %s2982_s20 = sphi %s3022_s20, %s17_s20   ;;  %s2978_s19 = sphi %s3020_s19, %s3574_s19   ;;  %s2974_s18 = sphi %s3018_s18, %s3573_s18   ;;  %s2970_s17 = sphi %s3016_s17, %s3572_s17   ;;  %s2966_s16 = sphi %s3014_s16, %s3571_s16   ;;  %s2962_s15 = sphi %s3012_s15, %s3570_s15  }
   0x5   : > { %s29_s23 = sadd.s32 1, %s2978_s19  ;;  %s127_s24 = sadd.s32 1, %s2970_s17 }
   0x6   : > { %p31_p0 = scmp.ge.s32.totalorder %s29_s23, 2  ;;  %p137_p1 = scmp.ne.s32.totalorder %s2970_s17, %s2966_s16 }
   0x7   : > { %p138_p2 = scmp.eq.s32.totalorder %s2041_s21, 1  ;;  %p143_p3 = scmp.ne.s32.totalorder %s2966_s16, %s2962_s15 }
   0x8   : > { %s3576_s23 = smov (%p31_p0, %s29_s23), 0  ;;  %p144_p5 = scmp.eq.s32.totalorder %s2042_s22, 1 }
   0x9   : > { %p3052_p4 = por %p138_p2, %p137_p1  ;;  %s122_s26 = ssub.s32 %s2978_s19, %s3576_s23 }
   0xa   : > { %p2045_p6 = scmp.ge.s32.totalorder %s2982_s20, 1  ;;  %p125_p7 = scmp.eq.s32.totalorder %s122_s26, 0 }
   0xb   : > { %p3059_p8 = por %p144_p5, %p143_p3  ;;  %p179_p9 = scmp.lt.s32.totalorder %s2982_s20, 3 }
   0xc   : > { %s3065_s28 = scalar_select %p125_p7, %s2970_s17, %s127_s24  }
   0xd   : > { %p180_p10 = pnand %p2045_p6, %p179_p9 }
   0xe   : > { %v2829_v0 = vld [vmem:[%s3564_s1 + $0x8] sm:$0x3f] (!%p180_p10)   ;;  %vm466_vm0 = vcmask (!%p180_p10), 1045504   ;;  %p205_p11 = scmp.lt.s32.totalorder (!%p180_p10), %s2974_s18, 1  ;;  %v2830_v1 = vld [vmem:[%s3564_s1] sm:$0x3f] (!%p180_p10)  }
   0xf   : > { %183 = sbr.rel (%p180_p10) target bundleno = 407 (0x197), region = 36  ;;  %2765 = vmatprep.subr.msk.bf16.mxu1 (!%p180_p10), %vm466_vm0, %v2829_v0  ;;  %v468_v2 = vsel (!%p180_p10), %vm466_vm0, %v2829_v0, 0  ;;  %v2836_v3 = vld [vmem:[%s3564_s1 + $0x10] sm:$0x3f] (!%p180_p10)   ;;  %2766 = vmatprep.subr.msk.bf16.mxu0 (!%p180_p10), %vm466_vm0, %v2830_v1  ;;  %v803_v4 = vsel (!%p180_p10), %vm466_vm0, %v2830_v1, 0  ;;  %vm393_vm1 = vcmask (!%p180_p10), 97280  }
  0x10   : > { %2518 = vmatpush3.bf16.msra.mxu1 (!%p180_p10), %v468_v2  ;;  %2568 = vmatpush3.bf16.msra.mxu0 (!%p180_p10), %v803_v4  ;;  %v1279_v16 = vsel (!%p180_p10), %vm466_vm0, %v2836_v3, 0  ;;  %s202_s26 = sand.u32 (!%p180_p10), 1, %s2966_s16   ;;  %s2771_s5 = smul.u32 (!%p180_p10), 3072, %s2974_s18 }
  0x11   : > { %2767 = vmatprep.subr.msk.bf16.mxu1 (!%p180_p10), %vm466_vm0, %v2830_v1  ;;  %2768 = vmatprep.subr.msk.bf16.mxu0 (!%p180_p10), %vm466_vm0, %v2836_v3  ;;  %s2769_s29 = smul.u32 (!%p180_p10), 192, %s202_s26  ;;  %s2984_s11 = smov (!%p180_p10), [#allocation2]  }
  0x12   : > { %s3509_s9 = scalar_lea.hbm (!%p180_p10), %s3567_s4, %s2771_s5  ;;  %s2908_s12 = sshll.u32 (!%p180_p10), %s2984_s11, 4  ;;  %s2909_s12 = int_to_ptr.vmem [resolvable:$false] %s2908_s12 }
  0x13   : > { %s3378_s30 = scalar_lea.vmem (!%p180_p10), [#allocation2], %s2769_s29 }
  0x14   : > { %s1968_s6 = sshll.u32 (!%p180_p10), %s3378_s30, 4  ;;  %s3511_s6 = int_to_ptr.vmem [resolvable:$true] %s1968_s6 }
  0x15   : > { %p2911_p1 = scmp.lt.s32.totalorder (!%p180_p10), %s3511_s6, %s2909_s12 }
  0x16   : > { %s206_s7 = scalar_select %p205_p11, %s2974_s18, 1 }
  0x17   : > { %s3517_s18 = scalar_lea.sflag [#allocation3], %s202_s26 }
  0x18   : > { %s2770_s10 = smul.u32 216, %s206_s7 }
  0x1a   : > { %s3087_s13 = scalar_lea.vmem %s3563_s0, %s2770_s10  ;;  %s2904_s10 = scalar_lea.vmem %s3511_s6, 3072 }
  0x1b   : > { %v214_v5 = vld [vmem:[%s3087_s13 + $0x8] sm:$0xf]  ;;  %v215_v6 = vld [vmem:[%s3087_s13 + $0xc] sm:$0xf]  ;;  %v216_v7 = vld [vmem:[%s3087_s13 + $0x10] sm:$0xf]  ;;  %p2905_p12 = scmp.ne.s32.totalorder %s3511_s6, %s2904_s10 }
  0x1c   : > { %v217_v8 = vld [vmem:[%s3087_s13 + $0x14] sm:$0xf]  ;;  %v218_v9 = vld [vmem:[%s3087_s13 + $0x18] sm:$0xf]  ;;  %v2049_v10 = vcombine.low %v215_v6, %v216_v7  ;;  %v2099_v11 = vcombine.low %v214_v5, %v215_v6  ;;  %v2835_v13 = vld [vmem:[%s3087_s13] sm:$0xff]  }
  0x1d   : > { %v2050_v12 = vcombine.low %v217_v8, %v218_v9  ;;  %v219_v14 = vld [vmem:[%s3087_s13 + $0x1c] sm:$0xf]  ;;  %v2100_v15 = vcombine.low %v216_v7, %v217_v8  ;;  %v220_v17 = vld [vmem:[%s3087_s13 + $0x20] sm:$0xf]  ;;  %2569 = vmatprep.mubr.msk.bf16.mxu0 %vm393_vm1, %v2835_v13  ;;  %v221_v19 = vld [vmem:[%s3087_s13 + $0x24] sm:$0xf]  ;;  %p2906_p13 = pnand %p2905_p12, %p3052_p4 }
  0x1e   : > { %2519 = vmatprep.mubr.msk.bf16.mxu1 %vm393_vm1, %v2049_v10  ;;  %v2051_v18 = vcombine.low %v219_v14, %v220_v17  ;;  %2570 = vmatmul.mubr.msk.bf16.vlgmr.msra.gmra.mrb[0].mxu0 %vm393_vm1, %v2099_v11  ;;  %v222_v20 = vld [vmem:[%s3087_s13 + $0x28] sm:$0xf]  ;;  %v223_v21 = vld [vmem:[%s3087_s13 + $0x2c] sm:$0xf]  ;;  %v224_v22 = vld [vmem:[%s3087_s13 + $0x30] sm:$0xf]  ;;  %v2101_v24 = vcombine.low %v218_v9, %v219_v14  ;;  %v2102_v26 = vcombine.low %v220_v17, %v221_v19 }
  0x1f   : > { %2520 = vmatmul.mubr.msk.bf16.vlgmr.msra.gmra.mrb[0].mxu1 %vm393_vm1, %v2050_v12  ;;  %2618 = vmatpush3.bf16.msra.mxu0 %v1279_v16  ;;  %v2052_v23 = vcombine.low %v221_v19, %v222_v20  ;;  %v2053_v25 = vcombine.low %v223_v21, %v224_v22  ;;  %v225_v27 = vld [vmem:[%s3087_s13 + $0x34] sm:$0xf]  ;;  %v226_v28 = vld [vmem:[%s3087_s13 + $0x38] sm:$0xf]  ;;  %v227_v29 = vld [vmem:[%s3087_s13 + $0x3c] sm:$0xf]  ;;  %v2103_v32 = vcombine.low %v222_v20, %v223_v21  ;;  %p2907_p0 = pneg %p2906_p13 }
  0x20   : > { %2668 = vmatpush3.bf16.msra.mxu1 %v803_v4  ;;  %2523 = vmatprep.mubr.msk.bf16.mxu1 %vm393_vm1, %v2051_v18  ;;  %v228_v30 = vld [vmem:[%s3087_s13 + $0x40] sm:$0xf]  ;;  %v2054_v31 = vcombine.low %v225_v27, %v226_v28  ;;  %v2104_v34 = vcombine.low %v224_v22, %v225_v27  ;;  %v229_v35 = vld [vmem:[%s3087_s13 + $0x44] sm:$0xf]  ;;  %v230_v36 = vld [vmem:[%s3087_s13 + $0x48] sm:$0xf]  ;;  %v2105_v40 = vcombine.low %v226_v28, %v227_v29 }
  0x21   : > { %2573 = vmatprep.mubr.msk.bf16.mxu0 %vm393_vm1, %v2100_v15  ;;  %v2055_v33 = vcombine.low %v227_v29, %v228_v30  ;;  %v231_v37 = vld [vmem:[%s3087_s13 + $0x4c] sm:$0xf]  ;;  %v232_v38 = vld [vmem:[%s3087_s13 + $0x50] sm:$0xf]  ;;  %v2056_v39 = vcombine.low %v229_v35, %v230_v36  ;;  %v2106_v42 = vcombine.low %v228_v30, %v229_v35  ;;  %v233_v43 = vld [vmem:[%s3087_s13 + $0x54] sm:$0xf] }
  0x22   : > { %v2057_v41 = vcombine.low %v231_v37, %v232_v38  ;;  %v234_v44 = vld [vmem:[%s3087_s13 + $0x58] sm:$0xf]  ;;  %v235_v45 = vld [vmem:[%s3087_s13 + $0x5c] sm:$0xf]  ;;  %v3132_v46 = vld [vmem:[%s3087_s13 + $0x60] sm:$0xf]  ;;  %v2107_v48 = vcombine.low %v230_v36, %v231_v37  ;;  %v2108_v50 = vcombine.low %v232_v38, %v233_v43 }
  0x23   : > { %v2058_v47 = vcombine.low %v233_v43, %v234_v44  ;;  %v2059_v49 = vcombine.low %v235_v45, %v3132_v46  ;;  %v3136_v51 = vld [vmem:[%s3087_s13 + $0x64] sm:$0xf]  ;;  %v3140_v52 = vld [vmem:[%s3087_s13 + $0x68] sm:$0xf]  ;;  %v3145_v53 = vld [vmem:[%s3087_s13 + $0x6c] sm:$0xf]  ;;  %v2109_v56 = vcombine.low %v234_v44, %v235_v45 }
  0x24   : > { %v3149_v54 = vld [vmem:[%s3087_s13 + $0x70] sm:$0xf]  ;;  %v2060_v55 = vcombine.low %v3136_v51, %v3140_v52  ;;  %v2858_v58 = vld [vmem:[%s3087_s13 + $0x18] sm:$0xff]   ;;  %v3160_v59 = vld [vmem:[%s3087_s13 + $0x74] sm:$0xf]  ;;  %v2110_v37 = vcombine.low %v3132_v46, %v3136_v51 }
  0x25   : > { %v2061_v57 = vcombine.low %v3145_v53, %v3149_v54  ;;  %v3163_v60 = vld [vmem:[%s3087_s13 + $0x78] sm:$0xf]  ;;  %v3167_v61 = vld [vmem:[%s3087_s13 + $0x7c] sm:$0xf]  ;;  %v3170_v62 = vld [vmem:[%s3087_s13 + $0x80] sm:$0xf] }
  0x26   : > { %2574 = vmatmul.mubr.msk.bf16.gmra.mrb[4].mxu0 %vm393_vm1, %v2101_v24  ;;  %v2062_v63 = vcombine.low %v3160_v59, %v3163_v60  ;;  %v2860_v0 = vld [vmem:[%s3087_s13 + $0x20] sm:$0xff]   ;;  %v2063_v1 = vcombine.low %v3167_v61, %v3170_v62  ;;  %v2862_v2 = vld [vmem:[%s3087_s13 + $0x28] sm:$0xff]   ;;  %v3192_v6 = vld [vmem:[%s3087_s13 + $0x90] sm:$0xf]  ;;  %v2113_v43 = vcombine.low %v3163_v60, %v3167_v61 }
  0x27   : > { %2524 = vmatmul.mubr.msk.bf16.gmra.mrb[4].mxu1 %vm393_vm1, %v2052_v23  ;;  %2577 = vmatprep.mubr.msk.bf16.mxu0 %vm393_vm1, %v2102_v26  ;;  %v3182_v3 = vld [vmem:[%s3087_s13 + $0x84] sm:$0xf]  ;;  %v3185_v4 = vld [vmem:[%s3087_s13 + $0x88] sm:$0xf]  ;;  %v3189_v5 = vld [vmem:[%s3087_s13 + $0x8c] sm:$0xf] }
  0x28   : > { %2527 = vmatprep.mubr.msk.bf16.mxu1 %vm393_vm1, %v2053_v25  ;;  %v2064_v7 = vcombine.low %v3182_v3, %v3185_v4  ;;  %v2864_v8 = vld [vmem:[%s3087_s13 + $0x30] sm:$0xff]   ;;  %v2065_v9 = vcombine.low %v3189_v5, %v3192_v6  ;;  %v2866_v10 = vld [vmem:[%s3087_s13 + $0x38] sm:$0xff]   ;;  %v3214_v14 = vld [vmem:[%s3087_s13 + $0xa0] sm:$0xf]  ;;  %v2114_v45 = vcombine.low %v3170_v62, %v3182_v3 }
  0x29   : > { %v3204_v11 = vld [vmem:[%s3087_s13 + $0x94] sm:$0xf]  ;;  %v3207_v12 = vld [vmem:[%s3087_s13 + $0x98] sm:$0xf]  ;;  %v3211_v13 = vld [vmem:[%s3087_s13 + $0x9c] sm:$0xf] }
  0x2a   : > { %v2066_v15 = vcombine.low %v3204_v11, %v3207_v12  ;;  %v2868_v16 = vld [vmem:[%s3087_s13 + $0x40] sm:$0xff]   ;;  %v2067_v17 = vcombine.low %v3211_v13, %v3214_v14  ;;  %v2870_v18 = vld [vmem:[%s3087_s13 + $0x48] sm:$0xff]   ;;  %v3236_v22 = vld [vmem:[%s3087_s13 + $0xb0] sm:$0xf]  ;;  %v2117_v51 = vcombine.low %v3207_v12, %v3211_v13 }
  0x2b   : > { %v3226_v19 = vld [vmem:[%s3087_s13 + $0xa4] sm:$0xf]  ;;  %v3229_v20 = vld [vmem:[%s3087_s13 + $0xa8] sm:$0xf]  ;;  %v3233_v21 = vld [vmem:[%s3087_s13 + $0xac] sm:$0xf] }
  0x2c   : > { %v2068_v23 = vcombine.low %v3226_v19, %v3229_v20  ;;  %v2872_v24 = vld [vmem:[%s3087_s13 + $0x50] sm:$0xff]   ;;  %v2069_v25 = vcombine.low %v3233_v21, %v3236_v22  ;;  %v2874_v26 = vld [vmem:[%s3087_s13 + $0x58] sm:$0xff]   ;;  %v262_v30 = vld [vmem:[%s3087_s13 + $0xc0] sm:$0xf] }
  0x2d   : > { %v257_v27 = vld [vmem:[%s3087_s13 + $0xb4] sm:$0xf]  ;;  %v3249_v28 = vld [vmem:[%s3087_s13 + $0xb8] sm:$0xf]  ;;  %v259_v29 = vld [vmem:[%s3087_s13 + $0xbc] sm:$0xf] }
  0x2e   : > { %2578 = vmatmul.mubr.msk.bf16.gmra.mrb[8].mxu0 %vm393_vm1, %v2103_v32  ;;  %v2876_v32 = vld [vmem:[%s3087_s13 + $0x60] sm:$0xff]   ;;  %v2880_v36 = vld [vmem:[%s3087_s13 + $0x70] sm:$0xff]   ;;  %v2882_v38 = vld [vmem:[%s3087_s13 + $0x78] sm:$0xff]  }
  0x2f   : > { %2528 = vmatmul.mubr.msk.bf16.gmra.mrb[8].mxu1 %vm393_vm1, %v2054_v31  ;;  %2581 = vmatprep.mubr.msk.bf16.mxu0 %vm393_vm1, %v2104_v34  ;;  %v2070_v31 = vcombine.low %v257_v27, %v3249_v28  ;;  %v2878_v34 = vld [vmem:[%s3087_s13 + $0x68] sm:$0xff]   ;;  %v2887_v44 = vld [vmem:[%s3087_s13 + $0x90] sm:$0xff]   ;;  %v2889_v46 = vld [vmem:[%s3087_s13 + $0x98] sm:$0xff]  }
  0x30   : > { %2531 = vmatprep.mubr.msk.bf16.mxu1 %vm393_vm1, %v2055_v33  ;;  %v2071_v33 = vcombine.low %v259_v29, %v262_v30  ;;  %v2879_v35 = vld [vmem:[%s3087_s13 + $0xc4] sm:$0xff]   ;;  %v2903_v60 = vld [vmem:[%s3087_s13 + $0xd0] sm:$0xff]  }
  0x36   : > { %2582 = vmatmul.mubr.msk.bf16.gmra.mrb[12].mxu0 %vm393_vm1, %v2105_v40  ;;  %v2883_v40 = vld [vmem:[%s3087_s13 + $0x80] sm:$0xff]  }
  0x37   : > { %2532 = vmatmul.mubr.msk.bf16.gmra.mrb[12].mxu1 %vm393_vm1, %v2056_v39  ;;  %2585 = vmatprep.mubr.msk.bf16.mxu0 %vm393_vm1, %v2106_v42  ;;  %v2111_v39 = vcombine.low %v3140_v52, %v3145_v53  ;;  %v2885_v42 = vld [vmem:[%s3087_s13 + $0x88] sm:$0xff]   ;;  %v2895_v52 = vld [vmem:[%s3087_s13 + $0xb0] sm:$0xff]   ;;  %v2118_v53 = vcombine.low %v3214_v14, %v3226_v19 }
  0x38   : > { %2535 = vmatprep.mubr.msk.bf16.mxu1 %vm393_vm1, %v2057_v41  ;;  %v2112_v41 = vcombine.low %v3149_v54, %v3160_v59  ;;  %v2897_v54 = vld [vmem:[%s3087_s13 + $0xb8] sm:$0xff]   ;;  %v2121_v59 = vcombine.low %v3249_v28, %v259_v29 }
  0x3e   : > { %2586 = vmatmul.mubr.msk.bf16.gmra.mrb[16].mxu0 %vm393_vm1, %v2107_v48  ;;  %v2891_v48 = vld [vmem:[%s3087_s13 + $0xa0] sm:$0xff]  }
  0x3f   : > { %2536 = vmatmul.mubr.msk.bf16.gmra.mrb[16].mxu1 %vm393_vm1, %v2058_v47  ;;  %2589 = vmatprep.mubr.msk.bf16.mxu0 %vm393_vm1, %v2108_v50  ;;  %v2115_v47 = vcombine.low %v3185_v4, %v3189_v5  ;;  %v2893_v50 = vld [vmem:[%s3087_s13 + $0xa8] sm:$0xff]  }
  0x40   : > { %2539 = vmatprep.mubr.msk.bf16.mxu1 %vm393_vm1, %v2059_v49  ;;  %v2116_v49 = vcombine.low %v3192_v6, %v3204_v11 }
  0x46   : > { %2590 = vmatmul.mubr.msk.bf16.gmra.mrb[20].mxu0 %vm393_vm1, %v2109_v56  ;;  %v2899_v56 = vld [vmem:[%s3087_s13 + $0xc0] sm:$0xff]  }
  0x47   : > { %2540 = vmatmul.mubr.msk.bf16.gmra.mrb[20].mxu1 %vm393_vm1, %v2060_v55  ;;  %2619 = vmatprep.mubr.msk.bf16.mxu0 %vm393_vm1, %v2858_v58  ;;  %v2119_v55 = vcombine.low %v3229_v20, %v3233_v21  ;;  %v2901_v58 = vld [vmem:[%s3087_s13 + $0xc8] sm:$0xff]   ;;  %s2910_s13 = scalar_lea.vmem %s2909_s12, 6144 }
  0x48   : > { %2543 = vmatprep.mubr.msk.bf16.mxu1 %vm393_vm1, %v2061_v57  ;;  %v2120_v57 = vcombine.low %v3236_v22, %v257_v27  ;;  %v3358_v22 = vld [vmem:[%s3565_s2] ss:$0 sm:$0xff]  ;;  %p2912_p2 = scmp.lt.s32.totalorder %s2910_s13, %s2904_s10 }
  0x4a   : > { %p2913_p3 = por %p2912_p2, %p2911_p1 }
  0x4c   : > { %p2914_p5 = pnand %p2913_p3, %p2907_p0 }
  0x4e   : > { %2620 = vmatmul.mubr.msk.bf16.vlgmr.msra.gmra.mrb[0].mxu0 %vm393_vm1, %v2860_v0 }
  0x4f   : > { %2544 = vmatmul.mubr.msk.bf16.gmra.mrb[24].mxu1 %vm393_vm1, %v2062_v63  ;;  %2623 = vmatprep.mubr.msk.bf16.mxu0 %vm393_vm1, %v2862_v2 }
  0x50   : > { %2547 = vmatprep.mubr.msk.bf16.mxu1 %vm393_vm1, %v2063_v1 }
  0x56   : > { %2624 = vmatmul.mubr.msk.bf16.gmra.mrb[4].mxu0 %vm393_vm1, %v2864_v8 }
  0x57   : > { %2548 = vmatmul.mubr.msk.bf16.gmra.mrb[28].mxu1 %vm393_vm1, %v2064_v7  ;;  %2627 = vmatprep.mubr.msk.bf16.mxu0 %vm393_vm1, %v2866_v10 }
  0x58   : > { %2551 = vmatprep.mubr.msk.bf16.mxu1 %vm393_vm1, %v2065_v9 }
  0x5e   : > { %2628 = vmatmul.mubr.msk.bf16.gmra.mrb[8].mxu0 %vm393_vm1, %v2868_v16 }
  0x5f   : > { %2552 = vmatmul.mubr.msk.bf16.gmra.mrb[32].mxu1 %vm393_vm1, %v2066_v15  ;;  %2631 = vmatprep.mubr.msk.bf16.mxu0 %vm393_vm1, %v2870_v18 }
  0x60   : > { %2555 = vmatprep.mubr.msk.bf16.mxu1 %vm393_vm1, %v2067_v17 }
  0x66   : > { %2632 = vmatmul.mubr.msk.bf16.gmra.mrb[12].mxu0 %vm393_vm1, %v2872_v24 }
  0x67   : > { %2556 = vmatmul.mubr.msk.bf16.gmra.mrb[36].mxu1 %vm393_vm1, %v2068_v23  ;;  %2635 = vmatprep.mubr.msk.bf16.mxu0 %vm393_vm1, %v2874_v26 }
  0x68   : > { %2559 = vmatprep.mubr.msk.bf16.mxu1 %vm393_vm1, %v2069_v25  ;;  %v3363_v25 = vld [vmem:[%s3566_s3] ss:$0 sm:$0xff] }
  0x6e   : > { %2636 = vmatmul.mubr.msk.bf16.gmra.mrb[16].mxu0 %vm393_vm1, %v2876_v32 }
  0x6f   : > { %2560 = vmatmul.mubr.msk.bf16.gmra.mrb[40].mxu1 %vm393_vm1, %v2070_v31  ;;  %2639 = vmatprep.mubr.msk.bf16.mxu0 %vm393_vm1, %v2878_v34 }
  0x70   : > { %2563 = vmatprep.mubr.msk.bf16.mxu1 %vm393_vm1, %v2071_v33 }
  0x76   : > { %2640 = vmatmul.mubr.msk.bf16.gmra.mrb[20].mxu0 %vm393_vm1, %v2880_v36 }
  0x77   : > { %2564 = vmatmul.mubr.msk.bf16.gmra.mrb[44].mxu1 %vm393_vm1, %v2879_v35  ;;  %2643 = vmatprep.mubr.msk.bf16.mxu0 %vm393_vm1, %v2882_v38 }
  0x78   : > { %2593 = vmatprep.mubr.msk.bf16.mxu1 %vm393_vm1, %v2110_v37 }
  0x7e   : > { %2644 = vmatmul.mubr.msk.bf16.gmra.mrb[24].mxu0 %vm393_vm1, %v2883_v40 }
  0x7f   : > { %2594 = vmatmul.mubr.msk.bf16.vlgmr.msra.gmra.mrb[24].mxu1 %vm393_vm1, %v2111_v39  ;;  %2647 = vmatprep.mubr.msk.bf16.mxu0 %vm393_vm1, %v2885_v42 }
  0x80   : > { %2597 = vmatprep.mubr.msk.bf16.mxu1 %vm393_vm1, %v2112_v41 }
  0x86   : > { %2648 = vmatmul.mubr.msk.bf16.gmra.mrb[28].mxu0 %vm393_vm1, %v2887_v44 }
  0x87   : > { %2598 = vmatmul.mubr.msk.bf16.gmra.mrb[28].mxu1 %vm393_vm1, %v2113_v43  ;;  %2651 = vmatprep.mubr.msk.bf16.mxu0 %vm393_vm1, %v2889_v46 }
  0x88   : > { %2601 = vmatprep.mubr.msk.bf16.mxu1 %vm393_vm1, %v2114_v45 }
  0x8e   : > { %2652 = vmatmul.mubr.msk.bf16.gmra.mrb[32].mxu0 %vm393_vm1, %v2891_v48 }
  0x8f   : > { %2602 = vmatmul.mubr.msk.bf16.gmra.mrb[32].mxu1 %vm393_vm1, %v2115_v47  ;;  %2655 = vmatprep.mubr.msk.bf16.mxu0 %vm393_vm1, %v2893_v50 }
  0x90   : > { %2605 = vmatprep.mubr.msk.bf16.mxu1 %vm393_vm1, %v2116_v49 }
  0x96   : > { %2656 = vmatmul.mubr.msk.bf16.gmra.mrb[36].mxu0 %vm393_vm1, %v2895_v52 }
  0x97   : > { %2606 = vmatmul.mubr.msk.bf16.gmra.mrb[36].mxu1 %vm393_vm1, %v2117_v51  ;;  %2659 = vmatprep.mubr.msk.bf16.mxu0 %vm393_vm1, %v2897_v54 }
  0x98   : > { %2609 = vmatprep.mubr.msk.bf16.mxu1 %vm393_vm1, %v2118_v53 }
  0x9e   : > { %2660 = vmatmul.mubr.msk.bf16.gmra.mrb[40].mxu0 %vm393_vm1, %v2899_v56 }
  0x9f   : > { %2610 = vmatmul.mubr.msk.bf16.gmra.mrb[40].mxu1 %vm393_vm1, %v2119_v55  ;;  %2663 = vmatprep.mubr.msk.bf16.mxu0 %vm393_vm1, %v2901_v58 }
  0xa0   : > { %2613 = vmatprep.mubr.msk.bf16.mxu1 %vm393_vm1, %v2120_v57 }
  0xa6   : > { %2664 = vmatmul.mubr.msk.bf16.gmra.mrb[44].mxu0 %vm393_vm1, %v2903_v60 }
  0xa7   : > { %2614 = vmatmul.mubr.msk.bf16.gmra.mrb[44].mxu1 %vm393_vm1, %v2121_v59 }
  0xf2   : > { %v2521_v61 = vpop.f32.mrb[0].mxu1 }
  0xf3   : > { %v504_v62 = vpop.f32.mrb[1].mxu1 }
  0xf4   : > { %v2522_v63 = vpop.f32.mrb[2].mxu1 }
  0xf5   : > { %v507_v0 = vpop.f32.mrb[3].mxu1 }
  0xfa   : > { %v2525_v1 = vpop.f32.mrb[4].mxu1 }
  0xfb   : > { %v520_v2 = vpop.f32.mrb[5].mxu1 }
  0xfc   : > { %v2526_v3 = vpop.f32.mrb[6].mxu1 }
  0xfd   : > { %v523_v4 = vpop.f32.mrb[7].mxu1 }
 0x102   : > { %v3323_v5 = vpop.f32.mrb[8].mxu1 }
 0x103   : > { %v3325_v6 = vpop.f32.mrb[9].mxu1 }
 0x104   : > { %v3327_v7 = vpop.f32.mrb[10].mxu1 }
 0x105   : > { %v3329_v8 = vpop.f32.mrb[11].mxu1 }
 0x10a   : > { %v3331_v9 = vpop.f32.mrb[12].mxu1 }
 0x10b   : > { %v3333_v10 = vpop.f32.mrb[13].mxu1 }
 0x10c   : > { %v3335_v11 = vpop.f32.mrb[14].mxu1 }
 0x10d   : > { %v3337_v12 = vpop.f32.mrb[15].mxu1 }
 0x112   : > { %v3339_v13 = vpop.f32.mrb[16].mxu1 }
 0x113   : > { %v3341_v14 = vpop.f32.mrb[17].mxu1 }
 0x114   : > { %v3343_v15 = vpop.f32.mrb[18].mxu1 }
 0x115   : > { %v3345_v16 = vpop.f32.mrb[19].mxu1 }
 0x11a   : > { %v3347_v17 = vpop.f32.mrb[20].mxu1 }
 0x11b   : > { %v3349_v18 = vpop.f32.mrb[21].mxu1 }
 0x11c   : > { %v3351_v19 = vpop.f32.mrb[22].mxu1 }
 0x11d   : > { %v3353_v20 = vpop.f32.mrb[23].mxu1 }
 0x121   : > { %v2621_v21 = vpop.f32.mrb[0].mxu0 }
 0x122   : > { %v2669_v23 = vadd.f32 %v2621_v21, %v2521_v61  ;;  %v1315_v24 = vpop.f32.mrb[1].mxu0 }
 0x123   : > { %v2670_v26 = vadd.f32 %v1315_v24, %v504_v62  ;;  %v2622_v27 = vpop.f32.mrb[2].mxu0 }
 0x124   : > { %v1563_v28 = vmul.f32 %v2669_v23, %v3358_v22  ;;  %v2671_v29 = vadd.f32 %v2622_v27, %v2522_v63  ;;  %v1318_v30 = vpop.f32.mrb[3].mxu0 }
 0x125   : > { %v1561_v31 = vmul.f32 %v2670_v26, %v3358_v22  ;;  %v2672_v32 = vadd.f32 %v1318_v30, %v507_v0 }
 0x126   : > { %v1618_v33 = vadd.f32 %v3363_v25, %v1563_v28  ;;  %v1564_v34 = vmul.f32 %v2671_v29, %v3358_v22 }
 0x127   : > { %v1616_v35 = vadd.f32 %v3363_v25, %v1561_v31  ;;  %v1562_v36 = vmul.f32 %v2672_v32, %v3358_v22 }
 0x128   : > { %v1619_v37 = vadd.f32 %v3363_v25, %v1564_v34  ;;  %v1666_v40 = vmax.f32 %v1618_v33, 0.0 }
 0x129   : > { %v1617_v38 = vadd.f32 %v3363_v25, %v1562_v36  ;;  %v2625_v39 = vpop.f32.mrb[4].mxu0  ;;  %v1664_v44 = vmax.f32 %v1616_v35, 0.0 }
 0x12a   : > { %v1667_v41 = vmax.f32 %v1619_v37, 0.0  ;;  %v2673_v42 = vadd.f32 %v2625_v39, %v2525_v1  ;;  %v1331_v43 = vpop.f32.mrb[5].mxu0 }
 0x12b   : > { %v1665_v45 = vmax.f32 %v1617_v38, 0.0  ;;  %v2674_v46 = vadd.f32 %v1331_v43, %v520_v2  ;;  %v2626_v47 = vpop.f32.mrb[6].mxu0 }
 0x12c   : > { %v2307_v48 = vpack.c.bf16 %v1667_v41, %v1666_v40  ;;  %v1567_v49 = vmul.f32 %v2673_v42, %v3358_v22  ;;  %v2675_v50 = vadd.f32 %v2626_v47, %v2526_v3  ;;  %v1334_v51 = vpop.f32.mrb[7].mxu0 }
 0x12d   : > { %v2302_v52 = vpack.c.bf16 %v1665_v45, %v1664_v44  ;;  %v1565_v53 = vmul.f32 %v2674_v46, %v3358_v22  ;;  %v2676_v54 = vadd.f32 %v1334_v51, %v523_v4 }
 0x12e   : > { %2419 = vst [vmem:[%s3378_s30 + $0x8] sm:$0xff] %v2307_v48   ;;  %v1622_v55 = vadd.f32 %v3363_v25, %v1567_v49  ;;  %v1568_v56 = vmul.f32 %v2675_v50, %v3358_v22 }
 0x12f   : > { %2303 = vst [vmem:[%s3378_s30] sm:$0xff] %v2302_v52   ;;  %v1620_v57 = vadd.f32 %v3363_v25, %v1565_v53  ;;  %v1566_v58 = vmul.f32 %v2676_v54, %v3358_v22 }
 0x130   : > { %v1623_v59 = vadd.f32 %v3363_v25, %v1568_v56  ;;  %v1670_v62 = vmax.f32 %v1622_v55, 0.0 }
 0x131   : > { %v1621_v60 = vadd.f32 %v3363_v25, %v1566_v58  ;;  %v2629_v61 = vpop.f32.mrb[8].mxu0  ;;  %v1668_v2 = vmax.f32 %v1620_v57, 0.0 }
 0x132   : > { %v1671_v63 = vmax.f32 %v1623_v59, 0.0  ;;  %v2677_v0 = vadd.f32 %v2629_v61, %v3323_v5  ;;  %v1347_v1 = vpop.f32.mrb[9].mxu0 }
 0x133   : > { %v1669_v3 = vmax.f32 %v1621_v60, 0.0  ;;  %v2678_v4 = vadd.f32 %v1347_v1, %v3325_v6  ;;  %v2630_v21 = vpop.f32.mrb[10].mxu0 }
 0x134   : > { %v2317_v23 = vpack.c.bf16 %v1671_v63, %v1670_v62  ;;  %v1571_v24 = vmul.f32 %v2677_v0, %v3358_v22  ;;  %v2679_v26 = vadd.f32 %v2630_v21, %v3327_v7  ;;  %v1350_v27 = vpop.f32.mrb[11].mxu0 }
 0x135   : > { %v2312_v28 = vpack.c.bf16 %v1669_v3, %v1668_v2  ;;  %v1569_v29 = vmul.f32 %v2678_v4, %v3358_v22  ;;  %v2680_v30 = vadd.f32 %v1350_v27, %v3329_v8 }
 0x136   : > { %2421 = vst [vmem:[%s3378_s30 + $0x18] sm:$0xff] %v2317_v23   ;;  %v1626_v5 = vadd.f32 %v3363_v25, %v1571_v24  ;;  %v1572_v31 = vmul.f32 %v2679_v26, %v3358_v22 }
 0x137   : > { %2420 = vst [vmem:[%s3378_s30 + $0x10] sm:$0xff] %v2312_v28   ;;  %v1624_v6 = vadd.f32 %v3363_v25, %v1569_v29  ;;  %v1570_v32 = vmul.f32 %v2680_v30, %v3358_v22 }
 0x138   : > { %v1627_v33 = vadd.f32 %v3363_v25, %v1572_v31  ;;  %v1674_v35 = vmax.f32 %v1626_v5, 0.0 }
 0x139   : > { %v1625_v7 = vadd.f32 %v3363_v25, %v1570_v32  ;;  %v2633_v34 = vpop.f32.mrb[12].mxu0  ;;  %v1672_v38 = vmax.f32 %v1624_v6, 0.0 }
 0x13a   : > { %v1675_v36 = vmax.f32 %v1627_v33, 0.0  ;;  %v2681_v8 = vadd.f32 %v2633_v34, %v3331_v9  ;;  %v1363_v37 = vpop.f32.mrb[13].mxu0 }
 0x13b   : > { %v1673_v39 = vmax.f32 %v1625_v7, 0.0  ;;  %v2682_v40 = vadd.f32 %v1363_v37, %v3333_v10  ;;  %v2634_v41 = vpop.f32.mrb[14].mxu0 }
 0x13c   : > { %v2327_v42 = vpack.c.bf16 %v1675_v36, %v1674_v35  ;;  %v1575_v43 = vmul.f32 %v2681_v8, %v3358_v22  ;;  %v2683_v44 = vadd.f32 %v2634_v41, %v3335_v11  ;;  %v1366_v45 = vpop.f32.mrb[15].mxu0 }
 0x13d   : > { %v2322_v46 = vpack.c.bf16 %v1673_v39, %v1672_v38  ;;  %v1573_v47 = vmul.f32 %v2682_v40, %v3358_v22  ;;  %v2684_v48 = vadd.f32 %v1366_v45, %v3337_v12 }
 0x13e   : > { %2423 = vst [vmem:[%s3378_s30 + $0x28] sm:$0xff] %v2327_v42   ;;  %v1630_v9 = vadd.f32 %v3363_v25, %v1575_v43  ;;  %v1576_v49 = vmul.f32 %v2683_v44, %v3358_v22 }
 0x13f   : > { %2422 = vst [vmem:[%s3378_s30 + $0x20] sm:$0xff] %v2322_v46   ;;  %v1628_v10 = vadd.f32 %v3363_v25, %v1573_v47  ;;  %v1574_v50 = vmul.f32 %v2684_v48, %v3358_v22 }
 0x140   : > { %v1631_v51 = vadd.f32 %v3363_v25, %v1576_v49  ;;  %v1678_v53 = vmax.f32 %v1630_v9, 0.0 }
 0x141   : > { %v1629_v11 = vadd.f32 %v3363_v25, %v1574_v50  ;;  %v2637_v52 = vpop.f32.mrb[16].mxu0  ;;  %v1676_v56 = vmax.f32 %v1628_v10, 0.0 }
 0x142   : > { %v1679_v54 = vmax.f32 %v1631_v51, 0.0  ;;  %v2685_v12 = vadd.f32 %v2637_v52, %v3339_v13  ;;  %v1379_v55 = vpop.f32.mrb[17].mxu0 }
 0x143   : > { %v1677_v57 = vmax.f32 %v1629_v11, 0.0  ;;  %v2686_v58 = vadd.f32 %v1379_v55, %v3341_v14  ;;  %v2638_v59 = vpop.f32.mrb[18].mxu0 }
 0x144   : > { %v2337_v60 = vpack.c.bf16 %v1679_v54, %v1678_v53  ;;  %v1579_v61 = vmul.f32 %v2685_v12, %v3358_v22  ;;  %v2687_v62 = vadd.f32 %v2638_v59, %v3343_v15  ;;  %v1382_v63 = vpop.f32.mrb[19].mxu0 }
 0x145   : > { %v2332_v0 = vpack.c.bf16 %v1677_v57, %v1676_v56  ;;  %v1577_v1 = vmul.f32 %v2686_v58, %v3358_v22  ;;  %v2688_v2 = vadd.f32 %v1382_v63, %v3345_v16 }
 0x146   : > { %2425 = vst [vmem:[%s3378_s30 + $0x38] sm:$0xff] %v2337_v60   ;;  %v1634_v13 = vadd.f32 %v3363_v25, %v1579_v61  ;;  %v1580_v3 = vmul.f32 %v2687_v62, %v3358_v22 }
 0x147   : > { %2424 = vst [vmem:[%s3378_s30 + $0x30] sm:$0xff] %v2332_v0   ;;  %v1632_v14 = vadd.f32 %v3363_v25, %v1577_v1  ;;  %v1578_v4 = vmul.f32 %v2688_v2, %v3358_v22 }
 0x148   : > { %v1635_v21 = vadd.f32 %v3363_v25, %v1580_v3  ;;  %v1682_v24 = vmax.f32 %v1634_v13, 0.0 }
 0x149   : > { %v1633_v15 = vadd.f32 %v3363_v25, %v1578_v4  ;;  %v2641_v23 = vpop.f32.mrb[20].mxu0  ;;  %v1680_v28 = vmax.f32 %v1632_v14, 0.0 }
 0x14a   : > { %v1683_v26 = vmax.f32 %v1635_v21, 0.0  ;;  %v2689_v16 = vadd.f32 %v2641_v23, %v3347_v17  ;;  %v1395_v27 = vpop.f32.mrb[21].mxu0 }
 0x14b   : > { %v1681_v29 = vmax.f32 %v1633_v15, 0.0  ;;  %v2690_v30 = vadd.f32 %v1395_v27, %v3349_v18  ;;  %v2642_v5 = vpop.f32.mrb[22].mxu0 }
 0x14c   : > { %v2347_v31 = vpack.c.bf16 %v1683_v26, %v1682_v24  ;;  %v1583_v6 = vmul.f32 %v2689_v16, %v3358_v22  ;;  %v2691_v32 = vadd.f32 %v2642_v5, %v3351_v19  ;;  %v1398_v33 = vpop.f32.mrb[23].mxu0 }
 0x14d   : > { %v2342_v7 = vpack.c.bf16 %v1681_v29, %v1680_v28  ;;  %v1581_v34 = vmul.f32 %v2690_v30, %v3358_v22  ;;  %v2692_v35 = vadd.f32 %v1398_v33, %v3353_v20 }
 0x14e   : > { %2427 = vst [vmem:[%s3378_s30 + $0x48] sm:$0xff] %v2347_v31   ;;  %v1638_v17 = vadd.f32 %v3363_v25, %v1583_v6  ;;  %v1584_v36 = vmul.f32 %v2691_v32, %v3358_v22 }
 0x14f   : > { %2426 = vst [vmem:[%s3378_s30 + $0x40] sm:$0xff] %v2342_v7   ;;  %v1636_v18 = vadd.f32 %v3363_v25, %v1581_v34  ;;  %v1582_v8 = vmul.f32 %v2692_v35, %v3358_v22 }
 0x150   : > { %v1639_v37 = vadd.f32 %v3363_v25, %v1584_v36  ;;  %v1686_v41 = vmax.f32 %v1638_v17, 0.0 }
 0x151   : > { %v1637_v19 = vadd.f32 %v3363_v25, %v1582_v8  ;;  %v2645_v39 = vpop.f32.mrb[24].mxu0  ;;  %v1684_v45 = vmax.f32 %v1636_v18, 0.0 }
 0x152   : > { %v2595_v38 = vpop.f32.mrb[24].mxu1  ;;  %v1687_v42 = vmax.f32 %v1639_v37, 0.0  ;;  %v1411_v43 = vpop.f32.mrb[25].mxu0 }
 0x153   : > { %v935_v40 = vpop.f32.mrb[25].mxu1  ;;  %v2693_v20 = vadd.f32 %v2645_v39, %v2595_v38  ;;  %v1685_v46 = vmax.f32 %v1637_v19, 0.0  ;;  %v2646_v48 = vpop.f32.mrb[26].mxu0 }
 0x154   : > { %v2596_v44 = vpop.f32.mrb[26].mxu1  ;;  %v2694_v47 = vadd.f32 %v1411_v43, %v935_v40  ;;  %v2357_v49 = vpack.c.bf16 %v1687_v42, %v1686_v41  ;;  %v1414_v51 = vpop.f32.mrb[27].mxu0 }
 0x155   : > { %v938_v9 = vpop.f32.mrb[27].mxu1  ;;  %v1587_v10 = vmul.f32 %v2693_v20, %v3358_v22  ;;  %v2695_v50 = vadd.f32 %v2646_v48, %v2596_v44  ;;  %v2352_v11 = vpack.c.bf16 %v1685_v46, %v1684_v45 }
 0x156   : > { %v1585_v52 = vmul.f32 %v2694_v47, %v3358_v22  ;;  %v2696_v53 = vadd.f32 %v1414_v51, %v938_v9  ;;  %2429 = vst [vmem:[%s3378_s30 + $0x58] sm:$0xff] %v2357_v49  }
 0x157   : > { %v1642_v54 = vadd.f32 %v3363_v25, %v1587_v10  ;;  %v1588_v12 = vmul.f32 %v2695_v50, %v3358_v22  ;;  %2428 = vst [vmem:[%s3378_s30 + $0x50] sm:$0xff] %v2352_v11  }
 0x158   : > { %v1640_v55 = vadd.f32 %v3363_v25, %v1585_v52  ;;  %v1586_v56 = vmul.f32 %v2696_v53, %v3358_v22 }
 0x159   : > { %v1643_v57 = vadd.f32 %v3363_v25, %v1588_v12  ;;  %v2649_v60 = vpop.f32.mrb[28].mxu0  ;;  %v1690_v62 = vmax.f32 %v1642_v54, 0.0 }
 0x15a   : > { %v2599_v58 = vpop.f32.mrb[28].mxu1  ;;  %v1641_v59 = vadd.f32 %v3363_v25, %v1586_v56  ;;  %v1427_v1 = vpop.f32.mrb[29].mxu0  ;;  %v1688_v13 = vmax.f32 %v1640_v55, 0.0 }
 0x15b   : > { %v951_v61 = vpop.f32.mrb[29].mxu1  ;;  %v1691_v63 = vmax.f32 %v1643_v57, 0.0  ;;  %v2697_v0 = vadd.f32 %v2649_v60, %v2599_v58  ;;  %v2650_v4 = vpop.f32.mrb[30].mxu0 }
 0x15c   : > { %v2600_v2 = vpop.f32.mrb[30].mxu1  ;;  %v1689_v3 = vmax.f32 %v1641_v59, 0.0  ;;  %v2698_v14 = vadd.f32 %v1427_v1, %v951_v61  ;;  %v1430_v26 = vpop.f32.mrb[31].mxu0 }
 0x15d   : > { %v954_v21 = vpop.f32.mrb[31].mxu1  ;;  %v2367_v15 = vpack.c.bf16 %v1691_v63, %v1690_v62  ;;  %v1591_v23 = vmul.f32 %v2697_v0, %v3358_v22  ;;  %v2699_v24 = vadd.f32 %v2650_v4, %v2600_v2 }
 0x15e   : > { %v2362_v16 = vpack.c.bf16 %v1689_v3, %v1688_v13  ;;  %v1589_v27 = vmul.f32 %v2698_v14, %v3358_v22  ;;  %v2700_v28 = vadd.f32 %v1430_v26, %v954_v21 }
 0x15f   : > { %2431 = vst [vmem:[%s3378_s30 + $0x68] sm:$0xff] %v2367_v15   ;;  %v1646_v29 = vadd.f32 %v3363_v25, %v1591_v23  ;;  %v1592_v30 = vmul.f32 %v2699_v24, %v3358_v22 }
 0x160   : > { %2430 = vst [vmem:[%s3378_s30 + $0x60] sm:$0xff] %v2362_v16   ;;  %v1644_v5 = vadd.f32 %v3363_v25, %v1589_v27  ;;  %v1590_v31 = vmul.f32 %v2700_v28, %v3358_v22 }
 0x161   : > { %v1647_v6 = vadd.f32 %v3363_v25, %v1592_v30  ;;  %v2653_v7 = vpop.f32.mrb[32].mxu0  ;;  %v1694_v35 = vmax.f32 %v1646_v29, 0.0 }
 0x162   : > { %v2603_v32 = vpop.f32.mrb[32].mxu1  ;;  %v1645_v33 = vadd.f32 %v3363_v25, %v1590_v31  ;;  %v1443_v18 = vpop.f32.mrb[33].mxu0  ;;  %v1692_v37 = vmax.f32 %v1644_v5, 0.0 }
 0x163   : > { %v967_v34 = vpop.f32.mrb[33].mxu1  ;;  %v1695_v17 = vmax.f32 %v1647_v6, 0.0  ;;  %v2701_v36 = vadd.f32 %v2653_v7, %v2603_v32  ;;  %v2654_v39 = vpop.f32.mrb[34].mxu0 }
 0x164   : > { %v2604_v8 = vpop.f32.mrb[34].mxu1  ;;  %v1693_v38 = vmax.f32 %v1645_v33, 0.0  ;;  %v2702_v19 = vadd.f32 %v1443_v18, %v967_v34  ;;  %v1446_v43 = vpop.f32.mrb[35].mxu0 }
 0x165   : > { %v970_v40 = vpop.f32.mrb[35].mxu1  ;;  %v2377_v41 = vpack.c.bf16 %v1695_v17, %v1694_v35  ;;  %v1595_v42 = vmul.f32 %v2701_v36, %v3358_v22  ;;  %v2703_v20 = vadd.f32 %v2654_v39, %v2604_v8 }
 0x166   : > { %v2372_v44 = vpack.c.bf16 %v1693_v38, %v1692_v37  ;;  %v1593_v45 = vmul.f32 %v2702_v19, %v3358_v22  ;;  %v2704_v46 = vadd.f32 %v1446_v43, %v970_v40 }
 0x167   : > { %2433 = vst [vmem:[%s3378_s30 + $0x78] sm:$0xff] %v2377_v41   ;;  %v1650_v47 = vadd.f32 %v3363_v25, %v1595_v42  ;;  %v1596_v48 = vmul.f32 %v2703_v20, %v3358_v22 }
 0x168   : > { %2432 = vst [vmem:[%s3378_s30 + $0x70] sm:$0xff] %v2372_v44   ;;  %v1648_v9 = vadd.f32 %v3363_v25, %v1593_v45  ;;  %v1594_v49 = vmul.f32 %v2704_v46, %v3358_v22 }
 0x169   : > { %v1651_v10 = vadd.f32 %v3363_v25, %v1596_v48  ;;  %v2657_v11 = vpop.f32.mrb[36].mxu0  ;;  %v1698_v53 = vmax.f32 %v1650_v47, 0.0 }
 0x16a   : > { %v2607_v50 = vpop.f32.mrb[36].mxu1  ;;  %v1649_v51 = vadd.f32 %v3363_v25, %v1594_v49  ;;  %v1459_v55 = vpop.f32.mrb[37].mxu0  ;;  %v1696_v57 = vmax.f32 %v1648_v9, 0.0 }
 0x16b   : > { %v983_v52 = vpop.f32.mrb[37].mxu1  ;;  %v1699_v54 = vmax.f32 %v1651_v10, 0.0  ;;  %v2705_v12 = vadd.f32 %v2657_v11, %v2607_v50  ;;  %v2658_v60 = vpop.f32.mrb[38].mxu0 }
 0x16c   : > { %v2608_v56 = vpop.f32.mrb[38].mxu1  ;;  %v1697_v58 = vmax.f32 %v1649_v51, 0.0  ;;  %v2706_v59 = vadd.f32 %v1459_v55, %v983_v52  ;;  %v1462_v1 = vpop.f32.mrb[39].mxu0 }
 0x16d   : > { %v986_v61 = vpop.f32.mrb[39].mxu1  ;;  %v2387_v62 = vpack.c.bf16 %v1699_v54, %v1698_v53  ;;  %v1599_v63 = vmul.f32 %v2705_v12, %v3358_v22  ;;  %v2707_v0 = vadd.f32 %v2658_v60, %v2608_v56 }
 0x16e   : > { %v2382_v2 = vpack.c.bf16 %v1697_v58, %v1696_v57  ;;  %v1597_v13 = vmul.f32 %v2706_v59, %v3358_v22  ;;  %v2708_v3 = vadd.f32 %v1462_v1, %v986_v61 }
 0x16f   : > { %2435 = vst [vmem:[%s3378_s30 + $0x88] sm:$0xff] %v2387_v62   ;;  %v1654_v14 = vadd.f32 %v3363_v25, %v1599_v63  ;;  %v1600_v4 = vmul.f32 %v2707_v0, %v3358_v22 }
 0x170   : > { %2434 = vst [vmem:[%s3378_s30 + $0x80] sm:$0xff] %v2382_v2   ;;  %v1652_v21 = vadd.f32 %v3363_v25, %v1597_v13  ;;  %v1598_v15 = vmul.f32 %v2708_v3, %v3358_v22 }
 0x171   : > { %v1655_v23 = vadd.f32 %v3363_v25, %v1600_v4  ;;  %v2661_v16 = vpop.f32.mrb[40].mxu0  ;;  %v1702_v28 = vmax.f32 %v1654_v14, 0.0 }
 0x172   : > { %v2611_v24 = vpop.f32.mrb[40].mxu1  ;;  %v1653_v26 = vadd.f32 %v3363_v25, %v1598_v15  ;;  %v1475_v5 = vpop.f32.mrb[41].mxu0  ;;  %v1700_v6 = vmax.f32 %v1652_v21, 0.0 }
 0x173   : > { %v999_v27 = vpop.f32.mrb[41].mxu1  ;;  %v1703_v29 = vmax.f32 %v1655_v23, 0.0  ;;  %v2709_v30 = vadd.f32 %v2661_v16, %v2611_v24  ;;  %v2662_v7 = vpop.f32.mrb[42].mxu0 }
 0x174   : > { %v2612_v31 = vpop.f32.mrb[42].mxu1  ;;  %v1701_v32 = vmax.f32 %v1653_v26, 0.0  ;;  %v2710_v33 = vadd.f32 %v1475_v5, %v999_v27  ;;  %v1478_v18 = vpop.f32.mrb[43].mxu0 }
 0x175   : > { %v1002_v34 = vpop.f32.mrb[43].mxu1  ;;  %v2397_v35 = vpack.c.bf16 %v1703_v29, %v1702_v28  ;;  %v1603_v17 = vmul.f32 %v2709_v30, %v3358_v22  ;;  %v2711_v36 = vadd.f32 %v2662_v7, %v2612_v31 }
 0x176   : > { %v2392_v8 = vpack.c.bf16 %v1701_v32, %v1700_v6  ;;  %v1601_v37 = vmul.f32 %v2710_v33, %v3358_v22  ;;  %v2712_v38 = vadd.f32 %v1478_v18, %v1002_v34 }
 0x177   : > { %2437 = vst [vmem:[%s3378_s30 + $0x98] sm:$0xff] %v2397_v35   ;;  %v1658_v19 = vadd.f32 %v3363_v25, %v1603_v17  ;;  %v1604_v39 = vmul.f32 %v2711_v36, %v3358_v22 }
 0x178   : > { %2436 = vst [vmem:[%s3378_s30 + $0x90] sm:$0xff] %v2392_v8   ;;  %v1656_v40 = vadd.f32 %v3363_v25, %v1601_v37  ;;  %v1602_v41 = vmul.f32 %v2712_v38, %v3358_v22 }
 0x179   : > { %v1659_v42 = vadd.f32 %v3363_v25, %v1604_v39  ;;  %v2665_v44 = vpop.f32.mrb[44].mxu0  ;;  %v1706_v46 = vmax.f32 %v1658_v19, 0.0 }
 0x17a   : > { %v2615_v20 = vpop.f32.mrb[44].mxu1  ;;  %v1657_v43 = vadd.f32 %v3363_v25, %v1602_v41  ;;  %v1491_v9 = vpop.f32.mrb[45].mxu0  ;;  %v1704_v10 = vmax.f32 %v1656_v40, 0.0 }
 0x17b   : > { %v1015_v45 = vpop.f32.mrb[45].mxu1  ;;  %v1707_v47 = vmax.f32 %v1659_v42, 0.0  ;;  %v2713_v48 = vadd.f32 %v2665_v44, %v2615_v20  ;;  %v2666_v11 = vpop.f32.mrb[46].mxu0 }
 0x17c   : > { %v2616_v49 = vpop.f32.mrb[46].mxu1  ;;  %v1705_v50 = vmax.f32 %v1657_v43, 0.0  ;;  %v2714_v51 = vadd.f32 %v1491_v9, %v1015_v45  ;;  %v1494_v55 = vpop.f32.mrb[47].mxu0 }
 0x17d   : > { %v1018_v52 = vpop.f32.mrb[47].mxu1  ;;  %v2407_v53 = vpack.c.bf16 %v1707_v47, %v1706_v46  ;;  %v1607_v54 = vmul.f32 %v2713_v48, %v3358_v22  ;;  %v2715_v12 = vadd.f32 %v2666_v11, %v2616_v49 }
 0x17e   : > { %v2402_v56 = vpack.c.bf16 %v1705_v50, %v1704_v10  ;;  %v1605_v57 = vmul.f32 %v2714_v51, %v3358_v22  ;;  %v2716_v58 = vadd.f32 %v1494_v55, %v1018_v52 }
 0x17f   : > { %2439 = vst [vmem:[%s3378_s30 + $0xa8] sm:$0xff] %v2407_v53   ;;  %v1662_v59 = vadd.f32 %v3363_v25, %v1607_v54  ;;  %v1608_v60 = vmul.f32 %v2715_v12, %v3358_v22 }
 0x180   : > { %2438 = vst [vmem:[%s3378_s30 + $0xa0] sm:$0xff] %v2402_v56   ;;  %v1660_v61 = vadd.f32 %v3363_v25, %v1605_v57  ;;  %v1606_v62 = vmul.f32 %v2716_v58, %v3358_v22 }
 0x181   : > { %v1663_v63 = vadd.f32 %v3363_v25, %v1608_v60  ;;  %v1710_v1 = vmax.f32 %v1662_v59, 0.0 }
 0x182   : > { %v1661_v0 = vadd.f32 %v3363_v25, %v1606_v62  ;;  %v1708_v13 = vmax.f32 %v1660_v61, 0.0 }
 0x183   : > { %v1711_v2 = vmax.f32 %v1663_v63, 0.0 }
 0x184   : > { %v1709_v3 = vmax.f32 %v1661_v0, 0.0 }
 0x185   : > { %v2417_v14 = vpack.c.bf16 %v1711_v2, %v1710_v1 }
 0x186   : > { %v2412_v4 = vpack.c.bf16 %v1709_v3, %v1708_v13 }
 0x187   : > { %2441 = vst [vmem:[%s3378_s30 + $0xb8] sm:$0xff] %v2417_v14  }
 0x188   : > { %2440 = vst [vmem:[%s3378_s30 + $0xb0] sm:$0xff] %v2412_v4  }
 0x189   : > { %2917 = shalt.err (!%p2914_p5)
}
 0x18a   : > { %s2918_s14 = scalar_lea.hbm %s3509_s9, 3072  ;;  %s2922_s24 = scalar_lea.hbm %s3567_s4, 6144 }
 0x18b   : > { %p2919_p6 = scmp.ne.s32.totalorder %s3509_s9, %s2918_s14  ;;  %p2923_p10 = scmp.lt.u32.totalorder %s3509_s9, %s3567_s4 }
 0x18c   : > { %p2924_p11 = scmp.lt.u32.totalorder %s2922_s24, %s2918_s14  ;;  %p2926_p13 = scmp.lt.u32.totalorder %s2918_s14, %s3509_s9 }
 0x18d   : > { %p2920_p7 = pnand %p2919_p6, %p3052_p4 }
 0x18e   : > { %p2925_p12 = por %p2924_p11, %p2923_p10 }
 0x18f   : > { %p2921_p9 = pneg %p2920_p7 }
 0x190   : > { %p2927_p0 = por %p2926_p13, %p2925_p12 }
 0x192   : > { %p2928_p1 = pnand %p2927_p0, %p2921_p9 }
 0x194   : > { %2931 = shalt.err (!%p2928_p1)
}
 0x195   : > { %s2985_s30 = smov 64   ;;  %s2986_s5 = smov 4  }
 0x196   : > { %2772 = dma.vmem_to_hbm [thread:$0]  (%p3052_p4), %s3511_s6, 3072, %s3509_s9, %s3517_s18, %s2985_s30, %s2985_s30, %s2986_s5  }
 0x197 PF: > { %p2778_p2 = scmp.ge.s32.totalorder %s2982_s20, 2  ;;  %s1983_s7 = sand.u32 1, %s2962_s15  }
 0x198   : > { %s1984_s8 = scalar_lea.sflag [#allocation3], %s1983_s7 }
 0x199   : > { %p2775_p3 = pnand %p2778_p2, %p3059_p8 }
 0x19b   : > { %2957 = dma.done.wait (!%p2775_p3), %s1984_s8, 3072  }
 0x19c   : > { %2959 = vsyncadd (!%p2775_p3), %s1984_s8, 4294964224  ;;  %s17_s20 = sadd.s32 1, %s2982_s20   ;;  %s3570_s15 = smov %s2966_s16 }
 0x19d   : > { %p14_p5 = scmp.ge.s32.totalorder %s17_s20, 4   ;;  %s3571_s16 = smov %s2970_s17 }
 0x19e   : > { %s3572_s17 = smov %s3065_s28  ;;  %s3573_s18 = smov %s2978_s19 }
 0x19f   : > { %s3574_s19 = smov %s3576_s23  ;;  %16 = sbr.rel (!%p14_p5) target bundleno = 4 (0x4), region = 73 }
 0x1a6   :  { %1989 = vsyncpa [#allocation3], 1 }
 0x1a7   :  { %1991 = vsyncpa [#allocation3 + $0x1], 1 }

// kernel: tpu_custom_call.1
= control target key start
LH: loop header
LB: loop body
LE: loop exit
PB: predicated region body
PF: predicated region fallthrough
CT: control target
= control target key end

     0   :  { %9 = vsyncpa [#allocation3], 0  ;;  %s3563_s0 = inlined_call_operand.vmem [shape: bf16[2,432,12], index: 0, kind: input, shape index: {}]   ;;  %s3564_s1 = inlined_call_operand.vmem [shape: bf16[3,12,128], index: 1, kind: input, shape index: {}]   ;;  %s3565_s2 = inlined_call_operand.vmem [shape: f32[1,128], index: 2, kind: input, shape index: {}]   ;;  %s3566_s3 = inlined_call_operand.vmem [shape: f32[1,128], index: 3, kind: input, shape index: {}]   ;;  %s3567_s4 = inlined_call_operand.hbm [shape: bf16[2,384,128], index: 4, kind: output, shape index: {}]  }
   0x1   :  { %11 = vsyncpa [#allocation3 + $0x1], 0  ;;  %s3012_s15 = smov 0   ;;  %s3014_s16 = smov 0  }
   0x2   :  { %s3016_s17 = smov 0   ;;  %s3018_s18 = smov 0  }
   0x3   :  { %s3020_s19 = smov 0   ;;  %s3022_s20 = smov 0  }
   0x4 LB: > { %s2041_s21 = sadd.s32 4294967295, %s2982_s20   ;;  %s2042_s22 = sadd.s32 4294967294, %s2982_s20   ;;  %s2982_s20 = sphi %s3022_s20, %s17_s20   ;;  %s2978_s19 = sphi %s3020_s19, %s3574_s19   ;;  %s2974_s18 = sphi %s3018_s18, %s3573_s18   ;;  %s2970_s17 = sphi %s3016_s17, %s3572_s17   ;;  %s2966_s16 = sphi %s3014_s16, %s3571_s16   ;;  %s2962_s15 = sphi %s3012_s15, %s3570_s15  }
   0x5   : > { %s29_s23 = sadd.s32 1, %s2978_s19  ;;  %s127_s24 = sadd.s32 1, %s2970_s17 }
   0x6   : > { %p31_p0 = scmp.ge.s32.totalorder %s29_s23, 2  ;;  %p137_p1 = scmp.ne.s32.totalorder %s2970_s17, %s2966_s16 }
   0x7   : > { %p138_p2 = scmp.eq.s32.totalorder %s2041_s21, 1  ;;  %p143_p3 = scmp.ne.s32.totalorder %s2966_s16, %s2962_s15 }
   0x8   : > { %s3576_s23 = smov (%p31_p0, %s29_s23), 0  ;;  %p144_p5 = scmp.eq.s32.totalorder %s2042_s22, 1 }
   0x9   : > { %p3052_p4 = por %p138_p2, %p137_p1  ;;  %s122_s26 = ssub.s32 %s2978_s19, %s3576_s23 }
   0xa   : > { %p2045_p6 = scmp.ge.s32.totalorder %s2982_s20, 1  ;;  %p125_p7 = scmp.eq.s32.totalorder %s122_s26, 0 }
   0xb   : > { %p3059_p8 = por %p144_p5, %p143_p3  ;;  %p179_p9 = scmp.lt.s32.totalorder %s2982_s20, 3 }
   0xc   : > { %s3065_s28 = scalar_select %p125_p7, %s2970_s17, %s127_s24  }
   0xd   : > { %p180_p10 = pnand %p2045_p6, %p179_p9 }
   0xe   : > { %v2829_v0 = vld [vmem:[%s3564_s1 + $0x8] sm:$0x3f] (!%p180_p10)   ;;  %vm466_vm0 = vcmask (!%p180_p10), 1045504   ;;  %p205_p11 = scmp.lt.s32.totalorder (!%p180_p10), %s2974_s18, 1  ;;  %v2830_v1 = vld [vmem:[%s3564_s1] sm:$0x3f] (!%p180_p10)  }
   0xf   : > { %183 = sbr.rel (%p180_p10) target bundleno = 407 (0x197), region = 36  ;;  %2765 = vmatprep.subr.msk.bf16.mxu1 (!%p180_p10), %vm466_vm0, %v2829_v0  ;;  %v468_v2 = vsel (!%p180_p10), %vm466_vm0, %v2829_v0, 0  ;;  %v2836_v3 = vld [vmem:[%s3564_s1 + $0x10] sm:$0x3f] (!%p180_p10)   ;;  %2766 = vmatprep.subr.msk.bf16.mxu0 (!%p180_p10), %vm466_vm0, %v2830_v1  ;;  %v803_v4 = vsel (!%p180_p10), %vm466_vm0, %v2830_v1, 0  ;;  %vm393_vm1 = vcmask (!%p180_p10), 97280  }
  0x10   : > { %2518 = vmatpush3.bf16.msra.mxu1 (!%p180_p10), %v468_v2  ;;  %2568 = vmatpush3.bf16.msra.mxu0 (!%p180_p10), %v803_v4  ;;  %v1279_v16 = vsel (!%p180_p10), %vm466_vm0, %v2836_v3, 0  ;;  %s202_s26 = sand.u32 (!%p180_p10), 1, %s2966_s16   ;;  %s2771_s5 = smul.u32 (!%p180_p10), 3072, %s2974_s18 }
  0x11   : > { %2767 = vmatprep.subr.msk.bf16.mxu1 (!%p180_p10), %vm466_vm0, %v2830_v1  ;;  %2768 = vmatprep.subr.msk.bf16.mxu0 (!%p180_p10), %vm466_vm0, %v2836_v3  ;;  %s2769_s29 = smul.u32 (!%p180_p10), 192, %s202_s26  ;;  %s2984_s11 = smov (!%p180_p10), [#allocation2]  }
  0x12   : > { %s3509_s9 = scalar_lea.hbm (!%p180_p10), %s3567_s4, %s2771_s5  ;;  %s2908_s12 = sshll.u32 (!%p180_p10), %s2984_s11, 4  ;;  %s2909_s12 = int_to_ptr.vmem [resolvable:$false] %s2908_s12 }
  0x13   : > { %s3378_s30 = scalar_lea.vmem (!%p180_p10), [#allocation2], %s2769_s29 }
  0x14   : > { %s1968_s6 = sshll.u32 (!%p180_p10), %s3378_s30, 4  ;;  %s3511_s6 = int_to_ptr.vmem [resolvable:$true] %s1968_s6 }
  0x15   : > { %p2911_p1 = scmp.lt.s32.totalorder (!%p180_p10), %s3511_s6, %s2909_s12 }
  0x16   : > { %s206_s7 = scalar_select %p205_p11, %s2974_s18, 1 }
  0x17   : > { %s3517_s18 = scalar_lea.sflag [#allocation3], %s202_s26 }
  0x18   : > { %s2770_s10 = smul.u32 216, %s206_s7 }
  0x1a   : > { %s3087_s13 = scalar_lea.vmem %s3563_s0, %s2770_s10  ;;  %s2904_s10 = scalar_lea.vmem %s3511_s6, 3072 }
  0x1b   : > { %v214_v5 = vld [vmem:[%s3087_s13 + $0x8] sm:$0xf]  ;;  %v215_v6 = vld [vmem:[%s3087_s13 + $0xc] sm:$0xf]  ;;  %v216_v7 = vld [vmem:[%s3087_s13 + $0x10] sm:$0xf]  ;;  %p2905_p12 = scmp.ne.s32.totalorder %s3511_s6, %s2904_s10 }
  0x1c   : > { %v217_v8 = vld [vmem:[%s3087_s13 + $0x14] sm:$0xf]  ;;  %v218_v9 = vld [vmem:[%s3087_s13 + $0x18] sm:$0xf]  ;;  %v2049_v10 = vcombine.low %v215_v6, %v216_v7  ;;  %v2099_v11 = vcombine.low %v214_v5, %v215_v6  ;;  %v2835_v13 = vld [vmem:[%s3087_s13] sm:$0xff]  }
  0x1d   : > { %v2050_v12 = vcombine.low %v217_v8, %v218_v9  ;;  %v219_v14 = vld [vmem:[%s3087_s13 + $0x1c] sm:$0xf]  ;;  %v2100_v15 = vcombine.low %v216_v7, %v217_v8  ;;  %v220_v17 = vld [vmem:[%s3087_s13 + $0x20] sm:$0xf]  ;;  %2569 = vmatprep.mubr.msk.bf16.mxu0 %vm393_vm1, %v2835_v13  ;;  %v221_v19 = vld [vmem:[%s3087_s13 + $0x24] sm:$0xf]  ;;  %p2906_p13 = pnand %p2905_p12, %p3052_p4 }
  0x1e   : > { %2519 = vmatprep.mubr.msk.bf16.mxu1 %vm393_vm1, %v2049_v10  ;;  %v2051_v18 = vcombine.low %v219_v14, %v220_v17  ;;  %2570 = vmatmul.mubr.msk.bf16.vlgmr.msra.gmra.mrb[0].mxu0 %vm393_vm1, %v2099_v11  ;;  %v222_v20 = vld [vmem:[%s3087_s13 + $0x28] sm:$0xf]  ;;  %v223_v21 = vld [vmem:[%s3087_s13 + $0x2c] sm:$0xf]  ;;  %v224_v22 = vld [vmem:[%s3087_s13 + $0x30] sm:$0xf]  ;;  %v2101_v24 = vcombine.low %v218_v9, %v219_v14  ;;  %v2102_v26 = vcombine.low %v220_v17, %v221_v19 }
  0x1f   : > { %2520 = vmatmul.mubr.msk.bf16.vlgmr.msra.gmra.mrb[0].mxu1 %vm393_vm1, %v2050_v12  ;;  %2618 = vmatpush3.bf16.msra.mxu0 %v1279_v16  ;;  %v2052_v23 = vcombine.low %v221_v19, %v222_v20  ;;  %v2053_v25 = vcombine.low %v223_v21, %v224_v22  ;;  %v225_v27 = vld [vmem:[%s3087_s13 + $0x34] sm:$0xf]  ;;  %v226_v28 = vld [vmem:[%s3087_s13 + $0x38] sm:$0xf]  ;;  %v227_v29 = vld [vmem:[%s3087_s13 + $0x3c] sm:$0xf]  ;;  %v2103_v32 = vcombine.low %v222_v20, %v223_v21  ;;  %p2907_p0 = pneg %p2906_p13 }
  0x20   : > { %2668 = vmatpush3.bf16.msra.mxu1 %v803_v4  ;;  %2523 = vmatprep.mubr.msk.bf16.mxu1 %vm393_vm1, %v2051_v18  ;;  %v228_v30 = vld [vmem:[%s3087_s13 + $0x40] sm:$0xf]  ;;  %v2054_v31 = vcombine.low %v225_v27, %v226_v28  ;;  %v2104_v34 = vcombine.low %v224_v22, %v225_v27  ;;  %v229_v35 = vld [vmem:[%s3087_s13 + $0x44] sm:$0xf]  ;;  %v230_v36 = vld [vmem:[%s3087_s13 + $0x48] sm:$0xf]  ;;  %v2105_v40 = vcombine.low %v226_v28, %v227_v29 }
  0x21   : > { %2573 = vmatprep.mubr.msk.bf16.mxu0 %vm393_vm1, %v2100_v15  ;;  %v2055_v33 = vcombine.low %v227_v29, %v228_v30  ;;  %v231_v37 = vld [vmem:[%s3087_s13 + $0x4c] sm:$0xf]  ;;  %v232_v38 = vld [vmem:[%s3087_s13 + $0x50] sm:$0xf]  ;;  %v2056_v39 = vcombine.low %v229_v35, %v230_v36  ;;  %v2106_v42 = vcombine.low %v228_v30, %v229_v35  ;;  %v233_v43 = vld [vmem:[%s3087_s13 + $0x54] sm:$0xf] }
  0x22   : > { %v2057_v41 = vcombine.low %v231_v37, %v232_v38  ;;  %v234_v44 = vld [vmem:[%s3087_s13 + $0x58] sm:$0xf]  ;;  %v235_v45 = vld [vmem:[%s3087_s13 + $0x5c] sm:$0xf]  ;;  %v3132_v46 = vld [vmem:[%s3087_s13 + $0x60] sm:$0xf]  ;;  %v2107_v48 = vcombine.low %v230_v36, %v231_v37  ;;  %v2108_v50 = vcombine.low %v232_v38, %v233_v43 }
  0x23   : > { %v2058_v47 = vcombine.low %v233_v43, %v234_v44  ;;  %v2059_v49 = vcombine.low %v235_v45, %v3132_v46  ;;  %v3136_v51 = vld [vmem:[%s3087_s13 + $0x64] sm:$0xf]  ;;  %v3140_v52 = vld [vmem:[%s3087_s13 + $0x68] sm:$0xf]  ;;  %v3145_v53 = vld [vmem:[%s3087_s13 + $0x6c] sm:$0xf]  ;;  %v2109_v56 = vcombine.low %v234_v44, %v235_v45 }
  0x24   : > { %v3149_v54 = vld [vmem:[%s3087_s13 + $0x70] sm:$0xf]  ;;  %v2060_v55 = vcombine.low %v3136_v51, %v3140_v52  ;;  %v2858_v58 = vld [vmem:[%s3087_s13 + $0x18] sm:$0xff]   ;;  %v3160_v59 = vld [vmem:[%s3087_s13 + $0x74] sm:$0xf]  ;;  %v2110_v37 = vcombine.low %v3132_v46, %v3136_v51 }
  0x25   : > { %v2061_v57 = vcombine.low %v3145_v53, %v3149_v54  ;;  %v3163_v60 = vld [vmem:[%s3087_s13 + $0x78] sm:$0xf]  ;;  %v3167_v61 = vld [vmem:[%s3087_s13 + $0x7c] sm:$0xf]  ;;  %v3170_v62 = vld [vmem:[%s3087_s13 + $0x80] sm:$0xf] }
  0x26   : > { %2574 = vmatmul.mubr.msk.bf16.gmra.mrb[4].mxu0 %vm393_vm1, %v2101_v24  ;;  %v2062_v63 = vcombine.low %v3160_v59, %v3163_v60  ;;  %v2860_v0 = vld [vmem:[%s3087_s13 + $0x20] sm:$0xff]   ;;  %v2063_v1 = vcombine.low %v3167_v61, %v3170_v62  ;;  %v2862_v2 = vld [vmem:[%s3087_s13 + $0x28] sm:$0xff]   ;;  %v3192_v6 = vld [vmem:[%s3087_s13 + $0x90] sm:$0xf]  ;;  %v2113_v43 = vcombine.low %v3163_v60, %v3167_v61 }
  0x27   : > { %2524 = vmatmul.mubr.msk.bf16.gmra.mrb[4].mxu1 %vm393_vm1, %v2052_v23  ;;  %2577 = vmatprep.mubr.msk.bf16.mxu0 %vm393_vm1, %v2102_v26  ;;  %v3182_v3 = vld [vmem:[%s3087_s13 + $0x84] sm:$0xf]  ;;  %v3185_v4 = vld [vmem:[%s3087_s13 + $0x88] sm:$0xf]  ;;  %v3189_v5 = vld [vmem:[%s3087_s13 + $0x8c] sm:$0xf] }
  0x28   : > { %2527 = vmatprep.mubr.msk.bf16.mxu1 %vm393_vm1, %v2053_v25  ;;  %v2064_v7 = vcombine.low %v3182_v3, %v3185_v4  ;;  %v2864_v8 = vld [vmem:[%s3087_s13 + $0x30] sm:$0xff]   ;;  %v2065_v9 = vcombine.low %v3189_v5, %v3192_v6  ;;  %v2866_v10 = vld [vmem:[%s3087_s13 + $0x38] sm:$0xff]   ;;  %v3214_v14 = vld [vmem:[%s3087_s13 + $0xa0] sm:$0xf]  ;;  %v2114_v45 = vcombine.low %v3170_v62, %v3182_v3 }
  0x29   : > { %v3204_v11 = vld [vmem:[%s3087_s13 + $0x94] sm:$0xf]  ;;  %v3207_v12 = vld [vmem:[%s3087_s13 + $0x98] sm:$0xf]  ;;  %v3211_v13 = vld [vmem:[%s3087_s13 + $0x9c] sm:$0xf] }
  0x2a   : > { %v2066_v15 = vcombine.low %v3204_v11, %v3207_v12  ;;  %v2868_v16 = vld [vmem:[%s3087_s13 + $0x40] sm:$0xff]   ;;  %v2067_v17 = vcombine.low %v3211_v13, %v3214_v14  ;;  %v2870_v18 = vld [vmem:[%s3087_s13 + $0x48] sm:$0xff]   ;;  %v3236_v22 = vld [vmem:[%s3087_s13 + $0xb0] sm:$0xf]  ;;  %v2117_v51 = vcombine.low %v3207_v12, %v3211_v13 }
  0x2b   : > { %v3226_v19 = vld [vmem:[%s3087_s13 + $0xa4] sm:$0xf]  ;;  %v3229_v20 = vld [vmem:[%s3087_s13 + $0xa8] sm:$0xf]  ;;  %v3233_v21 = vld [vmem:[%s3087_s13 + $0xac] sm:$0xf] }
  0x2c   : > { %v2068_v23 = vcombine.low %v3226_v19, %v3229_v20  ;;  %v2872_v24 = vld [vmem:[%s3087_s13 + $0x50] sm:$0xff]   ;;  %v2069_v25 = vcombine.low %v3233_v21, %v3236_v22  ;;  %v2874_v26 = vld [vmem:[%s3087_s13 + $0x58] sm:$0xff]   ;;  %v262_v30 = vld [vmem:[%s3087_s13 + $0xc0] sm:$0xf] }
  0x2d   : > { %v257_v27 = vld [vmem:[%s3087_s13 + $0xb4] sm:$0xf]  ;;  %v3249_v28 = vld [vmem:[%s3087_s13 + $0xb8] sm:$0xf]  ;;  %v259_v29 = vld [vmem:[%s3087_s13 + $0xbc] sm:$0xf] }
  0x2e   : > { %2578 = vmatmul.mubr.msk.bf16.gmra.mrb[8].mxu0 %vm393_vm1, %v2103_v32  ;;  %v2876_v32 = vld [vmem:[%s3087_s13 + $0x60] sm:$0xff]   ;;  %v2880_v36 = vld [vmem:[%s3087_s13 + $0x70] sm:$0xff]   ;;  %v2882_v38 = vld [vmem:[%s3087_s13 + $0x78] sm:$0xff]  }
  0x2f   : > { %2528 = vmatmul.mubr.msk.bf16.gmra.mrb[8].mxu1 %vm393_vm1, %v2054_v31  ;;  %2581 = vmatprep.mubr.msk.bf16.mxu0 %vm393_vm1, %v2104_v34  ;;  %v2070_v31 = vcombine.low %v257_v27, %v3249_v28  ;;  %v2878_v34 = vld [vmem:[%s3087_s13 + $0x68] sm:$0xff]   ;;  %v2887_v44 = vld [vmem:[%s3087_s13 + $0x90] sm:$0xff]   ;;  %v2889_v46 = vld [vmem:[%s3087_s13 + $0x98] sm:$0xff]  }
  0x30   : > { %2531 = vmatprep.mubr.msk.bf16.mxu1 %vm393_vm1, %v2055_v33  ;;  %v2071_v33 = vcombine.low %v259_v29, %v262_v30  ;;  %v2879_v35 = vld [vmem:[%s3087_s13 + $0xc4] sm:$0xff]   ;;  %v2903_v60 = vld [vmem:[%s3087_s13 + $0xd0] sm:$0xff]  }
  0x36   : > { %2582 = vmatmul.mubr.msk.bf16.gmra.mrb[12].mxu0 %vm393_vm1, %v2105_v40  ;;  %v2883_v40 = vld [vmem:[%s3087_s13 + $0x80] sm:$0xff]  }
  0x37   : > { %2532 = vmatmul.mubr.msk.bf16.gmra.mrb[12].mxu1 %vm393_vm1, %v2056_v39  ;;  %2585 = vmatprep.mubr.msk.bf16.mxu0 %vm393_vm1, %v2106_v42  ;;  %v2111_v39 = vcombine.low %v3140_v52, %v3145_v53  ;;  %v2885_v42 = vld [vmem:[%s3087_s13 + $0x88] sm:$0xff]   ;;  %v2895_v52 = vld [vmem:[%s3087_s13 + $0xb0] sm:$0xff]   ;;  %v2118_v53 = vcombine.low %v3214_v14, %v3226_v19 }
  0x38   : > { %2535 = vmatprep.mubr.msk.bf16.mxu1 %vm393_vm1, %v2057_v41  ;;  %v2112_v41 = vcombine.low %v3149_v54, %v3160_v59  ;;  %v2897_v54 = vld [vmem:[%s3087_s13 + $0xb8] sm:$0xff]   ;;  %v2121_v59 = vcombine.low %v3249_v28, %v259_v29 }
  0x3e   : > { %2586 = vmatmul.mubr.msk.bf16.gmra.mrb[16].mxu0 %vm393_vm1, %v2107_v48  ;;  %v2891_v48 = vld [vmem:[%s3087_s13 + $0xa0] sm:$0xff]  }
  0x3f   : > { %2536 = vmatmul.mubr.msk.bf16.gmra.mrb[16].mxu1 %vm393_vm1, %v2058_v47  ;;  %2589 = vmatprep.mubr.msk.bf16.mxu0 %vm393_vm1, %v2108_v50  ;;  %v2115_v47 = vcombine.low %v3185_v4, %v3189_v5  ;;  %v2893_v50 = vld [vmem:[%s3087_s13 + $0xa8] sm:$0xff]  }
  0x40   : > { %2539 = vmatprep.mubr.msk.bf16.mxu1 %vm393_vm1, %v2059_v49  ;;  %v2116_v49 = vcombine.low %v3192_v6, %v3204_v11 }
  0x46   : > { %2590 = vmatmul.mubr.msk.bf16.gmra.mrb[20].mxu0 %vm393_vm1, %v2109_v56  ;;  %v2899_v56 = vld [vmem:[%s3087_s13 + $0xc0] sm:$0xff]  }
  0x47   : > { %2540 = vmatmul.mubr.msk.bf16.gmra.mrb[20].mxu1 %vm393_vm1, %v2060_v55  ;;  %2619 = vmatprep.mubr.msk.bf16.mxu0 %vm393_vm1, %v2858_v58  ;;  %v2119_v55 = vcombine.low %v3229_v20, %v3233_v21  ;;  %v2901_v58 = vld [vmem:[%s3087_s13 + $0xc8] sm:$0xff]   ;;  %s2910_s13 = scalar_lea.vmem %s2909_s12, 6144 }
  0x48   : > { %2543 = vmatprep.mubr.msk.bf16.mxu1 %vm393_vm1, %v2061_v57  ;;  %v2120_v57 = vcombine.low %v3236_v22, %v257_v27  ;;  %v3358_v22 = vld [vmem:[%s3565_s2] ss:$0 sm:$0xff]  ;;  %p2912_p2 = scmp.lt.s32.totalorder %s2910_s13, %s2904_s10 }
  0x4a   : > { %p2913_p3 = por %p2912_p2, %p2911_p1 }
  0x4c   : > { %p2914_p5 = pnand %p2913_p3, %p2907_p0 }
  0x4e   : > { %2620 = vmatmul.mubr.msk.bf16.vlgmr.msra.gmra.mrb[0].mxu0 %vm393_vm1, %v2860_v0 }
  0x4f   : > { %2544 = vmatmul.mubr.msk.bf16.gmra.mrb[24].mxu1 %vm393_vm1, %v2062_v63  ;;  %2623 = vmatprep.mubr.msk.bf16.mxu0 %vm393_vm1, %v2862_v2 }
  0x50   : > { %2547 = vmatprep.mubr.msk.bf16.mxu1 %vm393_vm1, %v2063_v1 }
  0x56   : > { %2624 = vmatmul.mubr.msk.bf16.gmra.mrb[4].mxu0 %vm393_vm1, %v2864_v8 }
  0x57   : > { %2548 = vmatmul.mubr.msk.bf16.gmra.mrb[28].mxu1 %vm393_vm1, %v2064_v7  ;;  %2627 = vmatprep.mubr.msk.bf16.mxu0 %vm393_vm1, %v2866_v10 }
  0x58   : > { %2551 = vmatprep.mubr.msk.bf16.mxu1 %vm393_vm1, %v2065_v9 }
  0x5e   : > { %2628 = vmatmul.mubr.msk.bf16.gmra.mrb[8].mxu0 %vm393_vm1, %v2868_v16 }
  0x5f   : > { %2552 = vmatmul.mubr.msk.bf16.gmra.mrb[32].mxu1 %vm393_vm1, %v2066_v15  ;;  %2631 = vmatprep.mubr.msk.bf16.mxu0 %vm393_vm1, %v2870_v18 }
  0x60   : > { %2555 = vmatprep.mubr.msk.bf16.mxu1 %vm393_vm1, %v2067_v17 }
  0x66   : > { %2632 = vmatmul.mubr.msk.bf16.gmra.mrb[12].mxu0 %vm393_vm1, %v2872_v24 }
  0x67   : > { %2556 = vmatmul.mubr.msk.bf16.gmra.mrb[36].mxu1 %vm393_vm1, %v2068_v23  ;;  %2635 = vmatprep.mubr.msk.bf16.mxu0 %vm393_vm1, %v2874_v26 }
  0x68   : > { %2559 = vmatprep.mubr.msk.bf16.mxu1 %vm393_vm1, %v2069_v25  ;;  %v3363_v25 = vld [vmem:[%s3566_s3] ss:$0 sm:$0xff] }
  0x6e   : > { %2636 = vmatmul.mubr.msk.bf16.gmra.mrb[16].mxu0 %vm393_vm1, %v2876_v32 }
  0x6f   : > { %2560 = vmatmul.mubr.msk.bf16.gmra.mrb[40].mxu1 %vm393_vm1, %v2070_v31  ;;  %2639 = vmatprep.mubr.msk.bf16.mxu0 %vm393_vm1, %v2878_v34 }
  0x70   : > { %2563 = vmatprep.mubr.msk.bf16.mxu1 %vm393_vm1, %v2071_v33 }
  0x76   : > { %2640 = vmatmul.mubr.msk.bf16.gmra.mrb[20].mxu0 %vm393_vm1, %v2880_v36 }
  0x77   : > { %2564 = vmatmul.mubr.msk.bf16.gmra.mrb[44].mxu1 %vm393_vm1, %v2879_v35  ;;  %2643 = vmatprep.mubr.msk.bf16.mxu0 %vm393_vm1, %v2882_v38 }
  0x78   : > { %2593 = vmatprep.mubr.msk.bf16.mxu1 %vm393_vm1, %v2110_v37 }
  0x7e   : > { %2644 = vmatmul.mubr.msk.bf16.gmra.mrb[24].mxu0 %vm393_vm1, %v2883_v40 }
  0x7f   : > { %2594 = vmatmul.mubr.msk.bf16.vlgmr.msra.gmra.mrb[24].mxu1 %vm393_vm1, %v2111_v39  ;;  %2647 = vmatprep.mubr.msk.bf16.mxu0 %vm393_vm1, %v2885_v42 }
  0x80   : > { %2597 = vmatprep.mubr.msk.bf16.mxu1 %vm393_vm1, %v2112_v41 }
  0x86   : > { %2648 = vmatmul.mubr.msk.bf16.gmra.mrb[28].mxu0 %vm393_vm1, %v2887_v44 }
  0x87   : > { %2598 = vmatmul.mubr.msk.bf16.gmra.mrb[28].mxu1 %vm393_vm1, %v2113_v43  ;;  %2651 = vmatprep.mubr.msk.bf16.mxu0 %vm393_vm1, %v2889_v46 }
  0x88   : > { %2601 = vmatprep.mubr.msk.bf16.mxu1 %vm393_vm1, %v2114_v45 }
  0x8e   : > { %2652 = vmatmul.mubr.msk.bf16.gmra.mrb[32].mxu0 %vm393_vm1, %v2891_v48 }
  0x8f   : > { %2602 = vmatmul.mubr.msk.bf16.gmra.mrb[32].mxu1 %vm393_vm1, %v2115_v47  ;;  %2655 = vmatprep.mubr.msk.bf16.mxu0 %vm393_vm1, %v2893_v50 }
  0x90   : > { %2605 = vmatprep.mubr.msk.bf16.mxu1 %vm393_vm1, %v2116_v49 }
  0x96   : > { %2656 = vmatmul.mubr.msk.bf16.gmra.mrb[36].mxu0 %vm393_vm1, %v2895_v52 }
  0x97   : > { %2606 = vmatmul.mubr.msk.bf16.gmra.mrb[36].mxu1 %vm393_vm1, %v2117_v51  ;;  %2659 = vmatprep.mubr.msk.bf16.mxu0 %vm393_vm1, %v2897_v54 }
  0x98   : > { %2609 = vmatprep.mubr.msk.bf16.mxu1 %vm393_vm1, %v2118_v53 }
  0x9e   : > { %2660 = vmatmul.mubr.msk.bf16.gmra.mrb[40].mxu0 %vm393_vm1, %v2899_v56 }
  0x9f   : > { %2610 = vmatmul.mubr.msk.bf16.gmra.mrb[40].mxu1 %vm393_vm1, %v2119_v55  ;;  %2663 = vmatprep.mubr.msk.bf16.mxu0 %vm393_vm1, %v2901_v58 }
  0xa0   : > { %2613 = vmatprep.mubr.msk.bf16.mxu1 %vm393_vm1, %v2120_v57 }
  0xa6   : > { %2664 = vmatmul.mubr.msk.bf16.gmra.mrb[44].mxu0 %vm393_vm1, %v2903_v60 }
  0xa7   : > { %2614 = vmatmul.mubr.msk.bf16.gmra.mrb[44].mxu1 %vm393_vm1, %v2121_v59 }
  0xf2   : > { %v2521_v61 = vpop.f32.mrb[0].mxu1 }
  0xf3   : > { %v504_v62 = vpop.f32.mrb[1].mxu1 }
  0xf4   : > { %v2522_v63 = vpop.f32.mrb[2].mxu1 }
  0xf5   : > { %v507_v0 = vpop.f32.mrb[3].mxu1 }
  0xfa   : > { %v2525_v1 = vpop.f32.mrb[4].mxu1 }
  0xfb   : > { %v520_v2 = vpop.f32.mrb[5].mxu1 }
  0xfc   : > { %v2526_v3 = vpop.f32.mrb[6].mxu1 }
  0xfd   : > { %v523_v4 = vpop.f32.mrb[7].mxu1 }
 0x102   : > { %v3323_v5 = vpop.f32.mrb[8].mxu1 }
 0x103   : > { %v3325_v6 = vpop.f32.mrb[9].mxu1 }
 0x104   : > { %v3327_v7 = vpop.f32.mrb[10].mxu1 }
 0x105   : > { %v3329_v8 = vpop.f32.mrb[11].mxu1 }
 0x10a   : > { %v3331_v9 = vpop.f32.mrb[12].mxu1 }
 0x10b   : > { %v3333_v10 = vpop.f32.mrb[13].mxu1 }
 0x10c   : > { %v3335_v11 = vpop.f32.mrb[14].mxu1 }
 0x10d   : > { %v3337_v12 = vpop.f32.mrb[15].mxu1 }
 0x112   : > { %v3339_v13 = vpop.f32.mrb[16].mxu1 }
 0x113   : > { %v3341_v14 = vpop.f32.mrb[17].mxu1 }
 0x114   : > { %v3343_v15 = vpop.f32.mrb[18].mxu1 }
 0x115   : > { %v3345_v16 = vpop.f32.mrb[19].mxu1 }
 0x11a   : > { %v3347_v17 = vpop.f32.mrb[20].mxu1 }
 0x11b   : > { %v3349_v18 = vpop.f32.mrb[21].mxu1 }
 0x11c   : > { %v3351_v19 = vpop.f32.mrb[22].mxu1 }
 0x11d   : > { %v3353_v20 = vpop.f32.mrb[23].mxu1 }
 0x121   : > { %v2621_v21 = vpop.f32.mrb[0].mxu0 }
 0x122   : > { %v2669_v23 = vadd.f32 %v2621_v21, %v2521_v61  ;;  %v1315_v24 = vpop.f32.mrb[1].mxu0 }
 0x123   : > { %v2670_v26 = vadd.f32 %v1315_v24, %v504_v62  ;;  %v2622_v27 = vpop.f32.mrb[2].mxu0 }
 0x124   : > { %v1563_v28 = vmul.f32 %v2669_v23, %v3358_v22  ;;  %v2671_v29 = vadd.f32 %v2622_v27, %v2522_v63  ;;  %v1318_v30 = vpop.f32.mrb[3].mxu0 }
 0x125   : > { %v1561_v31 = vmul.f32 %v2670_v26, %v3358_v22  ;;  %v2672_v32 = vadd.f32 %v1318_v30, %v507_v0 }
 0x126   : > { %v1618_v33 = vadd.f32 %v3363_v25, %v1563_v28  ;;  %v1564_v34 = vmul.f32 %v2671_v29, %v3358_v22 }
 0x127   : > { %v1616_v35 = vadd.f32 %v3363_v25, %v1561_v31  ;;  %v1562_v36 = vmul.f32 %v2672_v32, %v3358_v22 }
 0x128   : > { %v1619_v37 = vadd.f32 %v3363_v25, %v1564_v34  ;;  %v1666_v40 = vmax.f32 %v1618_v33, 0.0 }
 0x129   : > { %v1617_v38 = vadd.f32 %v3363_v25, %v1562_v36  ;;  %v2625_v39 = vpop.f32.mrb[4].mxu0  ;;  %v1664_v44 = vmax.f32 %v1616_v35, 0.0 }
 0x12a   : > { %v1667_v41 = vmax.f32 %v1619_v37, 0.0  ;;  %v2673_v42 = vadd.f32 %v2625_v39, %v2525_v1  ;;  %v1331_v43 = vpop.f32.mrb[5].mxu0 }
 0x12b   : > { %v1665_v45 = vmax.f32 %v1617_v38, 0.0  ;;  %v2674_v46 = vadd.f32 %v1331_v43, %v520_v2  ;;  %v2626_v47 = vpop.f32.mrb[6].mxu0 }
 0x12c   : > { %v2307_v48 = vpack.c.bf16 %v1667_v41, %v1666_v40  ;;  %v1567_v49 = vmul.f32 %v2673_v42, %v3358_v22  ;;  %v2675_v50 = vadd.f32 %v2626_v47, %v2526_v3  ;;  %v1334_v51 = vpop.f32.mrb[7].mxu0 }
 0x12d   : > { %v2302_v52 = vpack.c.bf16 %v1665_v45, %v1664_v44  ;;  %v1565_v53 = vmul.f32 %v2674_v46, %v3358_v22  ;;  %v2676_v54 = vadd.f32 %v1334_v51, %v523_v4 }
 0x12e   : > { %2419 = vst [vmem:[%s3378_s30 + $0x8] sm:$0xff] %v2307_v48   ;;  %v1622_v55 = vadd.f32 %v3363_v25, %v1567_v49  ;;  %v1568_v56 = vmul.f32 %v2675_v50, %v3358_v22 }
 0x12f   : > { %2303 = vst [vmem:[%s3378_s30] sm:$0xff] %v2302_v52   ;;  %v1620_v57 = vadd.f32 %v3363_v25, %v1565_v53  ;;  %v1566_v58 = vmul.f32 %v2676_v54, %v3358_v22 }
 0x130   : > { %v1623_v59 = vadd.f32 %v3363_v25, %v1568_v56  ;;  %v1670_v62 = vmax.f32 %v1622_v55, 0.0 }
 0x131   : > { %v1621_v60 = vadd.f32 %v3363_v25, %v1566_v58  ;;  %v2629_v61 = vpop.f32.mrb[8].mxu0  ;;  %v1668_v2 = vmax.f32 %v1620_v57, 0.0 }
 0x132   : > { %v1671_v63 = vmax.f32 %v1623_v59, 0.0  ;;  %v2677_v0 = vadd.f32 %v2629_v61, %v3323_v5  ;;  %v1347_v1 = vpop.f32.mrb[9].mxu0 }
 0x133   : > { %v1669_v3 = vmax.f32 %v1621_v60, 0.0  ;;  %v2678_v4 = vadd.f32 %v1347_v1, %v3325_v6  ;;  %v2630_v21 = vpop.f32.mrb[10].mxu0 }
 0x134   : > { %v2317_v23 = vpack.c.bf16 %v1671_v63, %v1670_v62  ;;  %v1571_v24 = vmul.f32 %v2677_v0, %v3358_v22  ;;  %v2679_v26 = vadd.f32 %v2630_v21, %v3327_v7  ;;  %v1350_v27 = vpop.f32.mrb[11].mxu0 }
 0x135   : > { %v2312_v28 = vpack.c.bf16 %v1669_v3, %v1668_v2  ;;  %v1569_v29 = vmul.f32 %v2678_v4, %v3358_v22  ;;  %v2680_v30 = vadd.f32 %v1350_v27, %v3329_v8 }
 0x136   : > { %2421 = vst [vmem:[%s3378_s30 + $0x18] sm:$0xff] %v2317_v23   ;;  %v1626_v5 = vadd.f32 %v3363_v25, %v1571_v24  ;;  %v1572_v31 = vmul.f32 %v2679_v26, %v3358_v22 }
 0x137   : > { %2420 = vst [vmem:[%s3378_s30 + $0x10] sm:$0xff] %v2312_v28   ;;  %v1624_v6 = vadd.f32 %v3363_v25, %v1569_v29  ;;  %v1570_v32 = vmul.f32 %v2680_v30, %v3358_v22 }
 0x138   : > { %v1627_v33 = vadd.f32 %v3363_v25, %v1572_v31  ;;  %v1674_v35 = vmax.f32 %v1626_v5, 0.0 }
 0x139   : > { %v1625_v7 = vadd.f32 %v3363_v25, %v1570_v32  ;;  %v2633_v34 = vpop.f32.mrb[12].mxu0  ;;  %v1672_v38 = vmax.f32 %v1624_v6, 0.0 }
 0x13a   : > { %v1675_v36 = vmax.f32 %v1627_v33, 0.0  ;;  %v2681_v8 = vadd.f32 %v2633_v34, %v3331_v9  ;;  %v1363_v37 = vpop.f32.mrb[13].mxu0 }
 0x13b   : > { %v1673_v39 = vmax.f32 %v1625_v7, 0.0  ;;  %v2682_v40 = vadd.f32 %v1363_v37, %v3333_v10  ;;  %v2634_v41 = vpop.f32.mrb[14].mxu0 }
 0x13c   : > { %v2327_v42 = vpack.c.bf16 %v1675_v36, %v1674_v35  ;;  %v1575_v43 = vmul.f32 %v2681_v8, %v3358_v22  ;;  %v2683_v44 = vadd.f32 %v2634_v41, %v3335_v11  ;;  %v1366_v45 = vpop.f32.mrb[15].mxu0 }
 0x13d   : > { %v2322_v46 = vpack.c.bf16 %v1673_v39, %v1672_v38  ;;  %v1573_v47 = vmul.f32 %v2682_v40, %v3358_v22  ;;  %v2684_v48 = vadd.f32 %v1366_v45, %v3337_v12 }
 0x13e   : > { %2423 = vst [vmem:[%s3378_s30 + $0x28] sm:$0xff] %v2327_v42   ;;  %v1630_v9 = vadd.f32 %v3363_v25, %v1575_v43  ;;  %v1576_v49 = vmul.f32 %v2683_v44, %v3358_v22 }
 0x13f   : > { %2422 = vst [vmem:[%s3378_s30 + $0x20] sm:$0xff] %v2322_v46   ;;  %v1628_v10 = vadd.f32 %v3363_v25, %v1573_v47  ;;  %v1574_v50 = vmul.f32 %v2684_v48, %v3358_v22 }
 0x140   : > { %v1631_v51 = vadd.f32 %v3363_v25, %v1576_v49  ;;  %v1678_v53 = vmax.f32 %v1630_v9, 0.0 }
 0x141   : > { %v1629_v11 = vadd.f32 %v3363_v25, %v1574_v50  ;;  %v2637_v52 = vpop.f32.mrb[16].mxu0  ;;  %v1676_v56 = vmax.f32 %v1628_v10, 0.0 }
 0x142   : > { %v1679_v54 = vmax.f32 %v1631_v51, 0.0  ;;  %v2685_v12 = vadd.f32 %v2637_v52, %v3339_v13  ;;  %v1379_v55 = vpop.f32.mrb[17].mxu0 }
 0x143   : > { %v1677_v57 = vmax.f32 %v1629_v11, 0.0  ;;  %v2686_v58 = vadd.f32 %v1379_v55, %v3341_v14  ;;  %v2638_v59 = vpop.f32.mrb[18].mxu0 }
 0x144   : > { %v2337_v60 = vpack.c.bf16 %v1679_v54, %v1678_v53  ;;  %v1579_v61 = vmul.f32 %v2685_v12, %v3358_v22  ;;  %v2687_v62 = vadd.f32 %v2638_v59, %v3343_v15  ;;  %v1382_v63 = vpop.f32.mrb[19].mxu0 }
 0x145   : > { %v2332_v0 = vpack.c.bf16 %v1677_v57, %v1676_v56  ;;  %v1577_v1 = vmul.f32 %v2686_v58, %v3358_v22  ;;  %v2688_v2 = vadd.f32 %v1382_v63, %v3345_v16 }
 0x146   : > { %2425 = vst [vmem:[%s3378_s30 + $0x38] sm:$0xff] %v2337_v60   ;;  %v1634_v13 = vadd.f32 %v3363_v25, %v1579_v61  ;;  %v1580_v3 = vmul.f32 %v2687_v62, %v3358_v22 }
 0x147   : > { %2424 = vst [vmem:[%s3378_s30 + $0x30] sm:$0xff] %v2332_v0   ;;  %v1632_v14 = vadd.f32 %v3363_v25, %v1577_v1  ;;  %v1578_v4 = vmul.f32 %v2688_v2, %v3358_v22 }
 0x148   : > { %v1635_v21 = vadd.f32 %v3363_v25, %v1580_v3  ;;  %v1682_v24 = vmax.f32 %v1634_v13, 0.0 }
 0x149   : > { %v1633_v15 = vadd.f32 %v3363_v25, %v1578_v4  ;;  %v2641_v23 = vpop.f32.mrb[20].mxu0  ;;  %v1680_v28 = vmax.f32 %v1632_v14, 0.0 }
 0x14a   : > { %v1683_v26 = vmax.f32 %v1635_v21, 0.0  ;;  %v2689_v16 = vadd.f32 %v2641_v23, %v3347_v17  ;;  %v1395_v27 = vpop.f32.mrb[21].mxu0 }
 0x14b   : > { %v1681_v29 = vmax.f32 %v1633_v15, 0.0  ;;  %v2690_v30 = vadd.f32 %v1395_v27, %v3349_v18  ;;  %v2642_v5 = vpop.f32.mrb[22].mxu0 }
 0x14c   : > { %v2347_v31 = vpack.c.bf16 %v1683_v26, %v1682_v24  ;;  %v1583_v6 = vmul.f32 %v2689_v16, %v3358_v22  ;;  %v2691_v32 = vadd.f32 %v2642_v5, %v3351_v19  ;;  %v1398_v33 = vpop.f32.mrb[23].mxu0 }
 0x14d   : > { %v2342_v7 = vpack.c.bf16 %v1681_v29, %v1680_v28  ;;  %v1581_v34 = vmul.f32 %v2690_v30, %v3358_v22  ;;  %v2692_v35 = vadd.f32 %v1398_v33, %v3353_v20 }
 0x14e   : > { %2427 = vst [vmem:[%s3378_s30 + $0x48] sm:$0xff] %v2347_v31   ;;  %v1638_v17 = vadd.f32 %v3363_v25, %v1583_v6  ;;  %v1584_v36 = vmul.f32 %v2691_v32, %v3358_v22 }
 0x14f   : > { %2426 = vst [vmem:[%s3378_s30 + $0x40] sm:$0xff] %v2342_v7   ;;  %v1636_v18 = vadd.f32 %v3363_v25, %v1581_v34  ;;  %v1582_v8 = vmul.f32 %v2692_v35, %v3358_v22 }
 0x150   : > { %v1639_v37 = vadd.f32 %v3363_v25, %v1584_v36  ;;  %v1686_v41 = vmax.f32 %v1638_v17, 0.0 }
 0x151   : > { %v1637_v19 = vadd.f32 %v3363_v25, %v1582_v8  ;;  %v2645_v39 = vpop.f32.mrb[24].mxu0  ;;  %v1684_v45 = vmax.f32 %v1636_v18, 0.0 }
 0x152   : > { %v2595_v38 = vpop.f32.mrb[24].mxu1  ;;  %v1687_v42 = vmax.f32 %v1639_v37, 0.0  ;;  %v1411_v43 = vpop.f32.mrb[25].mxu0 }
 0x153   : > { %v935_v40 = vpop.f32.mrb[25].mxu1  ;;  %v2693_v20 = vadd.f32 %v2645_v39, %v2595_v38  ;;  %v1685_v46 = vmax.f32 %v1637_v19, 0.0  ;;  %v2646_v48 = vpop.f32.mrb[26].mxu0 }
 0x154   : > { %v2596_v44 = vpop.f32.mrb[26].mxu1  ;;  %v2694_v47 = vadd.f32 %v1411_v43, %v935_v40  ;;  %v2357_v49 = vpack.c.bf16 %v1687_v42, %v1686_v41  ;;  %v1414_v51 = vpop.f32.mrb[27].mxu0 }
 0x155   : > { %v938_v9 = vpop.f32.mrb[27].mxu1  ;;  %v1587_v10 = vmul.f32 %v2693_v20, %v3358_v22  ;;  %v2695_v50 = vadd.f32 %v2646_v48, %v2596_v44  ;;  %v2352_v11 = vpack.c.bf16 %v1685_v46, %v1684_v45 }
 0x156   : > { %v1585_v52 = vmul.f32 %v2694_v47, %v3358_v22  ;;  %v2696_v53 = vadd.f32 %v1414_v51, %v938_v9  ;;  %2429 = vst [vmem:[%s3378_s30 + $0x58] sm:$0xff] %v2357_v49  }
 0x157   : > { %v1642_v54 = vadd.f32 %v3363_v25, %v1587_v10  ;;  %v1588_v12 = vmul.f32 %v2695_v50, %v3358_v22  ;;  %2428 = vst [vmem:[%s3378_s30 + $0x50] sm:$0xff] %v2352_v11  }
 0x158   : > { %v1640_v55 = vadd.f32 %v3363_v25, %v1585_v52  ;;  %v1586_v56 = vmul.f32 %v2696_v53, %v3358_v22 }
 0x159   : > { %v1643_v57 = vadd.f32 %v3363_v25, %v1588_v12  ;;  %v2649_v60 = vpop.f32.mrb[28].mxu0  ;;  %v1690_v62 = vmax.f32 %v1642_v54, 0.0 }
 0x15a   : > { %v2599_v58 = vpop.f32.mrb[28].mxu1  ;;  %v1641_v59 = vadd.f32 %v3363_v25, %v1586_v56  ;;  %v1427_v1 = vpop.f32.mrb[29].mxu0  ;;  %v1688_v13 = vmax.f32 %v1640_v55, 0.0 }
 0x15b   : > { %v951_v61 = vpop.f32.mrb[29].mxu1  ;;  %v1691_v63 = vmax.f32 %v1643_v57, 0.0  ;;  %v2697_v0 = vadd.f32 %v2649_v60, %v2599_v58  ;;  %v2650_v4 = vpop.f32.mrb[30].mxu0 }
 0x15c   : > { %v2600_v2 = vpop.f32.mrb[30].mxu1  ;;  %v1689_v3 = vmax.f32 %v1641_v59, 0.0  ;;  %v2698_v14 = vadd.f32 %v1427_v1, %v951_v61  ;;  %v1430_v26 = vpop.f32.mrb[31].mxu0 }
 0x15d   : > { %v954_v21 = vpop.f32.mrb[31].mxu1  ;;  %v2367_v15 = vpack.c.bf16 %v1691_v63, %v1690_v62  ;;  %v1591_v23 = vmul.f32 %v2697_v0, %v3358_v22  ;;  %v2699_v24 = vadd.f32 %v2650_v4, %v2600_v2 }
 0x15e   : > { %v2362_v16 = vpack.c.bf16 %v1689_v3, %v1688_v13  ;;  %v1589_v27 = vmul.f32 %v2698_v14, %v3358_v22  ;;  %v2700_v28 = vadd.f32 %v1430_v26, %v954_v21 }
 0x15f   : > { %2431 = vst [vmem:[%s3378_s30 + $0x68] sm:$0xff] %v2367_v15   ;;  %v1646_v29 = vadd.f32 %v3363_v25, %v1591_v23  ;;  %v1592_v30 = vmul.f32 %v2699_v24, %v3358_v22 }
 0x160   : > { %2430 = vst [vmem:[%s3378_s30 + $0x60] sm:$0xff] %v2362_v16   ;;  %v1644_v5 = vadd.f32 %v3363_v25, %v1589_v27  ;;  %v1590_v31 = vmul.f32 %v2700_v28, %v3358_v22 }
 0x161   : > { %v1647_v6 = vadd.f32 %v3363_v25, %v1592_v30  ;;  %v2653_v7 = vpop.f32.mrb[32].mxu0  ;;  %v1694_v35 = vmax.f32 %v1646_v29, 0.0 }
 0x162   : > { %v2603_v32 = vpop.f32.mrb[32].mxu1  ;;  %v1645_v33 = vadd.f32 %v3363_v25, %v1590_v31  ;;  %v1443_v18 = vpop.f32.mrb[33].mxu0  ;;  %v1692_v37 = vmax.f32 %v1644_v5, 0.0 }
 0x163   : > { %v967_v34 = vpop.f32.mrb[33].mxu1  ;;  %v1695_v17 = vmax.f32 %v1647_v6, 0.0  ;;  %v2701_v36 = vadd.f32 %v2653_v7, %v2603_v32  ;;  %v2654_v39 = vpop.f32.mrb[34].mxu0 }
 0x164   : > { %v2604_v8 = vpop.f32.mrb[34].mxu1  ;;  %v1693_v38 = vmax.f32 %v1645_v33, 0.0  ;;  %v2702_v19 = vadd.f32 %v1443_v18, %v967_v34  ;;  %v1446_v43 = vpop.f32.mrb[35].mxu0 }
 0x165   : > { %v970_v40 = vpop.f32.mrb[35].mxu1  ;;  %v2377_v41 = vpack.c.bf16 %v1695_v17, %v1694_v35  ;;  %v1595_v42 = vmul.f32 %v2701_v36, %v3358_v22  ;;  %v2703_v20 = vadd.f32 %v2654_v39, %v2604_v8 }
 0x166   : > { %v2372_v44 = vpack.c.bf16 %v1693_v38, %v1692_v37  ;;  %v1593_v45 = vmul.f32 %v2702_v19, %v3358_v22  ;;  %v2704_v46 = vadd.f32 %v1446_v43, %v970_v40 }
 0x167   : > { %2433 = vst [vmem:[%s3378_s30 + $0x78] sm:$0xff] %v2377_v41   ;;  %v1650_v47 = vadd.f32 %v3363_v25, %v1595_v42  ;;  %v1596_v48 = vmul.f32 %v2703_v20, %v3358_v22 }
 0x168   : > { %2432 = vst [vmem:[%s3378_s30 + $0x70] sm:$0xff] %v2372_v44   ;;  %v1648_v9 = vadd.f32 %v3363_v25, %v1593_v45  ;;  %v1594_v49 = vmul.f32 %v2704_v46, %v3358_v22 }
 0x169   : > { %v1651_v10 = vadd.f32 %v3363_v25, %v1596_v48  ;;  %v2657_v11 = vpop.f32.mrb[36].mxu0  ;;  %v1698_v53 = vmax.f32 %v1650_v47, 0.0 }
 0x16a   : > { %v2607_v50 = vpop.f32.mrb[36].mxu1  ;;  %v1649_v51 = vadd.f32 %v3363_v25, %v1594_v49  ;;  %v1459_v55 = vpop.f32.mrb[37].mxu0  ;;  %v1696_v57 = vmax.f32 %v1648_v9, 0.0 }
 0x16b   : > { %v983_v52 = vpop.f32.mrb[37].mxu1  ;;  %v1699_v54 = vmax.f32 %v1651_v10, 0.0  ;;  %v2705_v12 = vadd.f32 %v2657_v11, %v2607_v50  ;;  %v2658_v60 = vpop.f32.mrb[38].mxu0 }
 0x16c   : > { %v2608_v56 = vpop.f32.mrb[38].mxu1  ;;  %v1697_v58 = vmax.f32 %v1649_v51, 0.0  ;;  %v2706_v59 = vadd.f32 %v1459_v55, %v983_v52  ;;  %v1462_v1 = vpop.f32.mrb[39].mxu0 }
 0x16d   : > { %v986_v61 = vpop.f32.mrb[39].mxu1  ;;  %v2387_v62 = vpack.c.bf16 %v1699_v54, %v1698_v53  ;;  %v1599_v63 = vmul.f32 %v2705_v12, %v3358_v22  ;;  %v2707_v0 = vadd.f32 %v2658_v60, %v2608_v56 }
 0x16e   : > { %v2382_v2 = vpack.c.bf16 %v1697_v58, %v1696_v57  ;;  %v1597_v13 = vmul.f32 %v2706_v59, %v3358_v22  ;;  %v2708_v3 = vadd.f32 %v1462_v1, %v986_v61 }
 0x16f   : > { %2435 = vst [vmem:[%s3378_s30 + $0x88] sm:$0xff] %v2387_v62   ;;  %v1654_v14 = vadd.f32 %v3363_v25, %v1599_v63  ;;  %v1600_v4 = vmul.f32 %v2707_v0, %v3358_v22 }
 0x170   : > { %2434 = vst [vmem:[%s3378_s30 + $0x80] sm:$0xff] %v2382_v2   ;;  %v1652_v21 = vadd.f32 %v3363_v25, %v1597_v13  ;;  %v1598_v15 = vmul.f32 %v2708_v3, %v3358_v22 }
 0x171   : > { %v1655_v23 = vadd.f32 %v3363_v25, %v1600_v4  ;;  %v2661_v16 = vpop.f32.mrb[40].mxu0  ;;  %v1702_v28 = vmax.f32 %v1654_v14, 0.0 }
 0x172   : > { %v2611_v24 = vpop.f32.mrb[40].mxu1  ;;  %v1653_v26 = vadd.f32 %v3363_v25, %v1598_v15  ;;  %v1475_v5 = vpop.f32.mrb[41].mxu0  ;;  %v1700_v6 = vmax.f32 %v1652_v21, 0.0 }
 0x173   : > { %v999_v27 = vpop.f32.mrb[41].mxu1  ;;  %v1703_v29 = vmax.f32 %v1655_v23, 0.0  ;;  %v2709_v30 = vadd.f32 %v2661_v16, %v2611_v24  ;;  %v2662_v7 = vpop.f32.mrb[42].mxu0 }
 0x174   : > { %v2612_v31 = vpop.f32.mrb[42].mxu1  ;;  %v1701_v32 = vmax.f32 %v1653_v26, 0.0  ;;  %v2710_v33 = vadd.f32 %v1475_v5, %v999_v27  ;;  %v1478_v18 = vpop.f32.mrb[43].mxu0 }
 0x175   : > { %v1002_v34 = vpop.f32.mrb[43].mxu1  ;;  %v2397_v35 = vpack.c.bf16 %v1703_v29, %v1702_v28  ;;  %v1603_v17 = vmul.f32 %v2709_v30, %v3358_v22  ;;  %v2711_v36 = vadd.f32 %v2662_v7, %v2612_v31 }
 0x176   : > { %v2392_v8 = vpack.c.bf16 %v1701_v32, %v1700_v6  ;;  %v1601_v37 = vmul.f32 %v2710_v33, %v3358_v22  ;;  %v2712_v38 = vadd.f32 %v1478_v18, %v1002_v34 }
 0x177   : > { %2437 = vst [vmem:[%s3378_s30 + $0x98] sm:$0xff] %v2397_v35   ;;  %v1658_v19 = vadd.f32 %v3363_v25, %v1603_v17  ;;  %v1604_v39 = vmul.f32 %v2711_v36, %v3358_v22 }
 0x178   : > { %2436 = vst [vmem:[%s3378_s30 + $0x90] sm:$0xff] %v2392_v8   ;;  %v1656_v40 = vadd.f32 %v3363_v25, %v1601_v37  ;;  %v1602_v41 = vmul.f32 %v2712_v38, %v3358_v22 }
 0x179   : > { %v1659_v42 = vadd.f32 %v3363_v25, %v1604_v39  ;;  %v2665_v44 = vpop.f32.mrb[44].mxu0  ;;  %v1706_v46 = vmax.f32 %v1658_v19, 0.0 }
 0x17a   : > { %v2615_v20 = vpop.f32.mrb[44].mxu1  ;;  %v1657_v43 = vadd.f32 %v3363_v25, %v1602_v41  ;;  %v1491_v9 = vpop.f32.mrb[45].mxu0  ;;  %v1704_v10 = vmax.f32 %v1656_v40, 0.0 }
 0x17b   : > { %v1015_v45 = vpop.f32.mrb[45].mxu1  ;;  %v1707_v47 = vmax.f32 %v1659_v42, 0.0  ;;  %v2713_v48 = vadd.f32 %v2665_v44, %v2615_v20  ;;  %v2666_v11 = vpop.f32.mrb[46].mxu0 }
 0x17c   : > { %v2616_v49 = vpop.f32.mrb[46].mxu1  ;;  %v1705_v50 = vmax.f32 %v1657_v43, 0.0  ;;  %v2714_v51 = vadd.f32 %v1491_v9, %v1015_v45  ;;  %v1494_v55 = vpop.f32.mrb[47].mxu0 }
 0x17d   : > { %v1018_v52 = vpop.f32.mrb[47].mxu1  ;;  %v2407_v53 = vpack.c.bf16 %v1707_v47, %v1706_v46  ;;  %v1607_v54 = vmul.f32 %v2713_v48, %v3358_v22  ;;  %v2715_v12 = vadd.f32 %v2666_v11, %v2616_v49 }
 0x17e   : > { %v2402_v56 = vpack.c.bf16 %v1705_v50, %v1704_v10  ;;  %v1605_v57 = vmul.f32 %v2714_v51, %v3358_v22  ;;  %v2716_v58 = vadd.f32 %v1494_v55, %v1018_v52 }
 0x17f   : > { %2439 = vst [vmem:[%s3378_s30 + $0xa8] sm:$0xff] %v2407_v53   ;;  %v1662_v59 = vadd.f32 %v3363_v25, %v1607_v54  ;;  %v1608_v60 = vmul.f32 %v2715_v12, %v3358_v22 }
 0x180   : > { %2438 = vst [vmem:[%s3378_s30 + $0xa0] sm:$0xff] %v2402_v56   ;;  %v1660_v61 = vadd.f32 %v3363_v25, %v1605_v57  ;;  %v1606_v62 = vmul.f32 %v2716_v58, %v3358_v22 }
 0x181   : > { %v1663_v63 = vadd.f32 %v3363_v25, %v1608_v60  ;;  %v1710_v1 = vmax.f32 %v1662_v59, 0.0 }
 0x182   : > { %v1661_v0 = vadd.f32 %v3363_v25, %v1606_v62  ;;  %v1708_v13 = vmax.f32 %v1660_v61, 0.0 }
 0x183   : > { %v1711_v2 = vmax.f32 %v1663_v63, 0.0 }
 0x184   : > { %v1709_v3 = vmax.f32 %v1661_v0, 0.0 }
 0x185   : > { %v2417_v14 = vpack.c.bf16 %v1711_v2, %v1710_v1 }
 0x186   : > { %v2412_v4 = vpack.c.bf16 %v1709_v3, %v1708_v13 }
 0x187   : > { %2441 = vst [vmem:[%s3378_s30 + $0xb8] sm:$0xff] %v2417_v14  }
 0x188   : > { %2440 = vst [vmem:[%s3378_s30 + $0xb0] sm:$0xff] %v2412_v4  }
 0x189   : > { %2917 = shalt.err (!%p2914_p5)
}
 0x18a   : > { %s2918_s14 = scalar_lea.hbm %s3509_s9, 3072  ;;  %s2922_s24 = scalar_lea.hbm %s3567_s4, 6144 }
 0x18b   : > { %p2919_p6 = scmp.ne.s32.totalorder %s3509_s9, %s2918_s14  ;;  %p2923_p10 = scmp.lt.u32.totalorder %s3509_s9, %s3567_s4 }
 0x18c   : > { %p2924_p11 = scmp.lt.u32.totalorder %s2922_s24, %s2918_s14  ;;  %p2926_p13 = scmp.lt.u32.totalorder %s2918_s14, %s3509_s9 }
 0x18d   : > { %p2920_p7 = pnand %p2919_p6, %p3052_p4 }
 0x18e   : > { %p2925_p12 = por %p2924_p11, %p2923_p10 }
 0x18f   : > { %p2921_p9 = pneg %p2920_p7 }
 0x190   : > { %p2927_p0 = por %p2926_p13, %p2925_p12 }
 0x192   : > { %p2928_p1 = pnand %p2927_p0, %p2921_p9 }
 0x194   : > { %2931 = shalt.err (!%p2928_p1)
}
 0x195   : > { %s2985_s30 = smov 64   ;;  %s2986_s5 = smov 4  }
 0x196   : > { %2772 = dma.vmem_to_hbm [thread:$0]  (%p3052_p4), %s3511_s6, 3072, %s3509_s9, %s3517_s18, %s2985_s30, %s2985_s30, %s2986_s5  }
 0x197 PF: > { %p2778_p2 = scmp.ge.s32.totalorder %s2982_s20, 2  ;;  %s1983_s7 = sand.u32 1, %s2962_s15  }
 0x198   : > { %s1984_s8 = scalar_lea.sflag [#allocation3], %s1983_s7 }
 0x199   : > { %p2775_p3 = pnand %p2778_p2, %p3059_p8 }
 0x19b   : > { %2957 = dma.done.wait (!%p2775_p3), %s1984_s8, 3072  }
 0x19c   : > { %2959 = vsyncadd (!%p2775_p3), %s1984_s8, 4294964224  ;;  %s17_s20 = sadd.s32 1, %s2982_s20   ;;  %s3570_s15 = smov %s2966_s16 }
 0x19d   : > { %p14_p5 = scmp.ge.s32.totalorder %s17_s20, 4   ;;  %s3571_s16 = smov %s2970_s17 }
 0x19e   : > { %s3572_s17 = smov %s3065_s28  ;;  %s3573_s18 = smov %s2978_s19 }
 0x19f   : > { %s3574_s19 = smov %s3576_s23  ;;  %16 = sbr.rel (!%p14_p5) target bundleno = 4 (0x4), region = 73 }
 0x1a6   :  { %1989 = vsyncpa [#allocation3], 1 }
 0x1a7   :  { %1991 = vsyncpa [#allocation3 + $0x1], 1 }

</bundles_post_ra>
